<compile_context>
chip_gen: v6e
topology: v6e:2x2x1
jax: 0.10.0
libtpu: 0.0.40
codegen_flags: <defaults>
</compile_context>

<pallas_src>
import numpy as np
import jax
import jax.numpy as jnp
from jax.experimental import pallas as pl
from jax.experimental.pallas import tpu as pltpu


# ---------------------------------------------------------------------------
# Fused Pallas kernel
# ---------------------------------------------------------------------------
def make_fused_forward(B, N, C, HW, D):
    """Builds the fused forward: conv-reduce + MLP + LayerNorm for both paths,
    then per-batch scaled similarity logits (N, N) and its transpose."""
    BN = B * N

    def kernel(x1_ref, x2_ref, cw_ref, w1t_ref, w2t_ref, g_ref, beta_ref,
               cb_ref, scale_ref, li_ref, ld_ref):
        # x*_ref : (BN, C, HW) f32 patches, channel-first, spatial flattened row-major
        # cw_ref : (2, 1, C)   1x1 conv weights (img, depth)
        # cb_ref : (2,)        conv biases          (SMEM)
        # w1t_ref: (2, HW, HW) Linear1 weight.T
        # w2t_ref: (2, HW, D)  Linear2 weight.T
        # g_ref  : (2, 1, D)   LayerNorm gamma
        # beta_ref:(2, 1, D)   LayerNorm beta
        # scale_ref: (1,)      exp(logit_scale)     (SMEM)

        def encode(x_ref, p):  # p in {0, 1}, unrolled at trace time
            x = x_ref[...].astype(jnp.bfloat16)                       # (BN, C, HW)
            cw = cw_ref[p].astype(jnp.bfloat16)                       # (1, C)
            cwb = jnp.broadcast_to(cw[None], (BN, 1, C))              # (BN, 1, C)

            # 1x1 conv (C -> 1) as a batched MXU contraction:
            #   red3[n, 0, hw] = sum_c cw[c] * x[n, c, hw]
            red3 = jax.lax.dot_general(
                cwb, x,
                dimension_numbers=(((2,), (1,)), ((0,), (0,))),
                preferred_element_type=jnp.float32)                   # (BN, 1, HW)
            red = jnp.maximum(red3.reshape(BN, HW) + cb_ref[p], 0.0)  # bias + ReLU

            # encoder: Linear(bias=False) -> ReLU -> Linear(bias=False)
            h = jnp.dot(red.astype(jnp.bfloat16),
                        w1t_ref[p].astype(jnp.bfloat16),
                        preferred_element_type=jnp.float32)           # (BN, HW)
            h = jnp.maximum(h, 0.0)
            e = jnp.dot(h.astype(jnp.bfloat16),
                        w2t_ref[p].astype(jnp.bfloat16),
                        preferred_element_type=jnp.float32)           # (BN, D)

            # LayerNorm over last dim (eps=1e-5, biased variance — matches torch)
            mu = jnp.mean(e, axis=-1, keepdims=True)
            var = jnp.mean((e - mu) ** 2, axis=-1, keepdims=True)
            nrm = (e - mu) * jax.lax.rsqrt(var + 1e-5)
            return nrm * g_ref[p] + beta_ref[p]                       # (BN, D)

        e1 = encode(x1_ref, 0).reshape(B, N, D).astype(jnp.bfloat16)  # img
        e2 = encode(x2_ref, 1).reshape(B, N, D).astype(jnp.bfloat16)  # depth

        s = scale_ref[0]                                              # SMEM scalar
        # li[b] = s * e1[b] @ e2[b].T ; ld = per-batch transpose (computed as a
        # second dot_general with swapped operands — no explicit transpose).
        li = jax.lax.dot_general(e1, e2, (((2,), (2,)), ((0,), (0,))),
                                 preferred_element_type=jnp.float32)  # (B, N, N)
        ld = jax.lax.dot_general(e2, e1, (((2,), (2,)), ((0,), (0,))),
                                 preferred_element_type=jnp.float32)  # (B, N, N)
        li_ref[...] = s * li
        ld_ref[...] = s * ld

    def vmem(shape):
        return pl.BlockSpec(shape, lambda i: (0,) * len(shape))

    smem = pl.BlockSpec(memory_space=pltpu.MemorySpace.SMEM)

    return pl.pallas_call(
        kernel,
        out_shape=(jax.ShapeDtypeStruct((B, N, N), jnp.float32),
                   jax.ShapeDtypeStruct((B, N, N), jnp.float32)),
        grid=(1,),
        in_specs=[
            vmem((BN, C, HW)),        # x1 (img patches)
            vmem((BN, C, HW)),        # x2 (depth patches)
            vmem((2, 1, C)),          # conv weights
            vmem((2, HW, HW)),        # W1.T
            vmem((2, HW, D)),         # W2.T
            vmem((2, 1, D)),          # LN gamma
            vmem((2, 1, D)),          # LN beta
            smem,                     # conv biases (2,)
            smem,                     # exp(logit_scale) (1,)
        ],
        out_specs=(vmem((B, N, N)), vmem((B, N, N))),
        compiler_params=pltpu.CompilerParams(
            dimension_semantics=("arbitrary",)),
    )


# ---------------------------------------------------------------------------
# Host-side patch logic + parameter setup (outside the kernel)
# ---------------------------------------------------------------------------
def get_patch_grid(mask_c1, coarse_patch_size):
    # TODO(synk): data-dependent host logic (mirrors torch .item() in get_patches);
    # done in NumPy on host, not in Pallas.
    m = np.asarray(mask_c1)
    if m.ndim == 3:
        m = m[0]
    inds_x, inds_y = np.where(m)
    feat_height = int(inds_x.max()) + 1
    feat_width = int(inds_y.max()) + 1
    # (Keeps the reference module's width/height naming quirk.)
    nr_vertical = int(feat_width / coarse_patch_size + 0.5)    # row-block count
    nr_horizontal = int(feat_height / coarse_patch_size + 0.5)  # col-block count
    return nr_vertical, nr_horizontal


def extract_patches(feat, nr_v, nr_h, P):
    """(B, C, cH, cW) NCHW -> (B*N, C, P*P), N = nr_v*nr_h, patch order row-block
    major (matches the reference loop), spatial flattened row-major (matches
    .view(B*N, -1)). Single strided reshape/transpose — no per-patch loop."""
    B, C, cH, cW = feat.shape
    assert nr_v * P <= cH and nr_h * P <= cW, "patch grid exceeds feature map"
    x = feat[:, :, : nr_v * P, : nr_h * P]
    x = x.reshape(B, C, nr_v, P, nr_h, P)
    x = jnp.transpose(x, (0, 2, 4, 1, 3, 5))                  # (B, nr_v, nr_h, C, P, P)
    return x.reshape(B * nr_v * nr_h, C, P * P).astype(jnp.float32)


def init_params(key, C, enc_dim):
    D = enc_dim
    HW = 2 * enc_dim                    # Linear input dim == coarse_patch_size**2
    s = 0.02

    def one_path(k):
        kk = jax.random.split(k, 6)
        w1 = s * jax.random.normal(kk[0], (HW, HW), jnp.float32)   # Linear(HW, HW, bias=False)
        w2 = s * jax.random.normal(kk[1], (D, HW), jnp.float32)    # Linear(HW, D,  bias=False)
        return dict(
            conv_w=s * jax.random.normal(kk[2], (1, C), jnp.float32),   # Conv2d(256,1,1).weight
            conv_b=s * jax.random.normal(kk[3], (), jnp.float32),       # Conv2d bias
            w1t=w1.T,
            w2t=w2.T,
            gamma=1.0 + s * jax.random.normal(kk[4], (1, D), jnp.float32),
            beta=s * jax.random.normal(kk[5], (1, D), jnp.float32),
        )

    k_img, k_dep = jax.random.split(key)
    pi, pd = one_path(k_img), one_path(k_dep)
    stack = lambda name: jnp.stack([pi[name], pd[name]], axis=0)
    return {
        "conv_w": stack("conv_w"),      # (2, 1, C)
        "conv_b": stack("conv_b"),      # (2,)
        "w1t": stack("w1t"),            # (2, HW, HW)
        "w2t": stack("w2t"),            # (2, HW, D)
        "gamma": stack("gamma"),        # (2, 1, D)
        "beta": stack("beta"),          # (2, 1, D)
        "logit_scale": jnp.asarray(np.log(1.0 / 0.07), jnp.float32),
    }


def contrastive_forward(feat_c1, feat_c2, mask_c1, params, coarse_patch_size, enc_dim):
    B, C, cH, cW = feat_c1.shape
    P = coarse_patch_size
    nr_v, nr_h = get_patch_grid(mask_c1, P)
    N = nr_v * nr_h
    HW = P * P

    x1 = extract_patches(feat_c1, nr_v, nr_h, P)     # (B*N, C, HW)
    x2 = extract_patches(feat_c2, nr_v, nr_h, P)
    scale = jnp.exp(params["logit_scale"]).reshape(1).astype(jnp.float32)

    fwd = make_fused_forward(B, N, C, HW, enc_dim)
    return fwd(x1, x2, params["conv_w"], params["w1t"], params["w2t"],
               params["gamma"], params["beta"], params["conv_b"], scale)


# Pure-JAX reference (same bf16-at-MXU-boundary policy) for correctness check.
def reference_forward(x1, x2, params, B, N, D):
    def enc(x, p):
        cw = params["conv_w"][p].astype(jnp.bfloat16)                    # (1, C)
        red = jnp.einsum("kc,nch->nkh", cw, x.astype(jnp.bfloat16),
                         preferred_element_type=jnp.float32)[:, 0, :]
        red = jnp.maximum(red + params["conv_b"][p], 0.0)
        h = jnp.maximum(
            jnp.dot(red.astype(jnp.bfloat16), params["w1t"][p].astype(jnp.bfloat16),
                    preferred_element_type=jnp.float32), 0.0)
        e = jnp.dot(h.astype(jnp.bfloat16), params["w2t"][p].astype(jnp.bfloat16),
                    preferred_element_type=jnp.float32)
        mu = e.mean(-1, keepdims=True)
        var = ((e - mu) ** 2).mean(-1, keepdims=True)
        return ((e - mu) * jax.lax.rsqrt(var + 1e-5)) * params["gamma"][p] + params["beta"][p]

    e1 = enc(x1, 0).reshape(B, N, D).astype(jnp.bfloat16)
    e2 = enc(x2, 1).reshape(B, N, D).astype(jnp.bfloat16)
    s = jnp.exp(params["logit_scale"])
    li = s * jnp.einsum("bnd,bmd->bnm", e1, e2, preferred_element_type=jnp.float32)
    ld = s * jnp.einsum("bnd,bmd->bnm", e2, e1, preferred_element_type=jnp.float32)
    return li, ld


# ---------------------------------------------------------------------------
# Main
# ---------------------------------------------------------------------------
if __name__ == "__main__":
    # config['resolution'][0] = 16 -> coarse_patch_size = 128/16 = 8,
    # enc_dim = 8*8/2 = 32. Conv input channels fixed at 256 by the module.
    config = {"resolution": (16, 4)}
    coarse_scale = config["resolution"][0]
    coarse_patch_size = 128 // coarse_scale                  # 8
    enc_dim = (coarse_patch_size * coarse_patch_size) // 2   # 32

    B, C, cH, cW = 2, 256, 16, 16                            # -> N = 4 patches

    key = jax.random.PRNGKey(0)
    k_feat1, k_feat2, k_params = jax.random.split(key, 3)
    feat_c1 = jax.random.normal(k_feat1, (B, C, cH, cW), jnp.float32)
    feat_c2 = jax.random.normal(k_feat2, (B, C, cH, cW), jnp.float32)
    mask_c1 = jnp.ones((1, cH, cW), dtype=bool)

    params = init_params(k_params, C, enc_dim)

    logits_img, logits_depth = contrastive_forward(
        feat_c1, feat_c2, mask_c1, params, coarse_patch_size, enc_dim)
    jax.block_until_ready((logits_img, logits_depth))

    N = 4
    assert logits_img.shape == (B, N, N) and logits_depth.shape == (B, N, N)

    # logits_per_depth must be the per-batch transpose of logits_per_img
    np.testing.assert_allclose(
        np.asarray(logits_depth), np.transpose(np.asarray(logits_img), (0, 2, 1)),
        rtol=1e-5, atol=1e-5)

    # check against the pure-JAX reference
    nr_v, nr_h = get_patch_grid(mask_c1, coarse_patch_size)
    x1 = extract_patches(feat_c1, nr_v, nr_h, coarse_patch_size)
    x2 = extract_patches(feat_c2, nr_v, nr_h, coarse_patch_size)
    ref_img, ref_depth = reference_forward(x1, x2, params, B, N, enc_dim)
    np.testing.assert_allclose(np.asarray(logits_img), np.asarray(ref_img),
                               rtol=1e-2, atol=1e-2)
    np.testing.assert_allclose(np.asarray(logits_depth), np.asarray(ref_depth),
                               rtol=1e-2, atol=1e-2)

    print("KERNEL_OK")
</pallas_src>

<mosaic_0001>
module attributes {stable_mosaic.version = 11 : i64} {
  func.func @kernel(%arg0: i32, %arg1: memref<8x256x64xf32, #tpu.memory_space<vmem>>, %arg2: memref<8x256x64xf32, #tpu.memory_space<vmem>>, %arg3: memref<2x1x256xf32, #tpu.memory_space<vmem>>, %arg4: memref<2x64x64xf32, #tpu.memory_space<vmem>>, %arg5: memref<2x64x32xf32, #tpu.memory_space<vmem>>, %arg6: memref<2x1x32xf32, #tpu.memory_space<vmem>>, %arg7: memref<2x1x32xf32, #tpu.memory_space<vmem>>, %arg8: memref<2xf32, #tpu.memory_space<smem>>, %arg9: memref<1xf32, #tpu.memory_space<smem>>, %arg10: memref<2x4x4xf32, #tpu.memory_space<vmem>>, %arg11: memref<2x4x4xf32, #tpu.memory_space<vmem>>) attributes {dimension_semantics = [#tpu.dimension_semantics<arbitrary>], iteration_bounds = array<i64: 1>, scalar_prefetch = 0 : i64, scratch_operands = 0 : i64, tpu.core_type = #tpu.core_type<tc>, window_params = [{pipeline_mode = #tpu.pipeline_mode<synchronous>, transform_indices = @transform_0, window_bounds = array<i64: 8, 256, 64>}, {pipeline_mode = #tpu.pipeline_mode<synchronous>, transform_indices = @transform_1, window_bounds = array<i64: 8, 256, 64>}, {pipeline_mode = #tpu.pipeline_mode<synchronous>, transform_indices = @transform_2, window_bounds = array<i64: 2, 1, 256>}, {pipeline_mode = #tpu.pipeline_mode<synchronous>, transform_indices = @transform_3, window_bounds = array<i64: 2, 64, 64>}, {pipeline_mode = #tpu.pipeline_mode<synchronous>, transform_indices = @transform_4, window_bounds = array<i64: 2, 64, 32>}, {pipeline_mode = #tpu.pipeline_mode<synchronous>, transform_indices = @transform_5, window_bounds = array<i64: 2, 1, 32>}, {pipeline_mode = #tpu.pipeline_mode<synchronous>, transform_indices = @transform_6, window_bounds = array<i64: 2, 1, 32>}, {transform_indices = @transform_7, window_bounds = array<i64: 2>}, {transform_indices = @transform_8, window_bounds = array<i64: 1>}, {pipeline_mode = #tpu.pipeline_mode<synchronous>, transform_indices = @transform_9, window_bounds = array<i64: 2, 4, 4>}, {pipeline_mode = #tpu.pipeline_mode<synchronous>, transform_indices = @transform_10, window_bounds = array<i64: 2, 4, 4>}]} {
    %c0 = arith.constant 0 : index
    %c0_0 = arith.constant 0 : index
    %c0_1 = arith.constant 0 : index
    %0 = vector.load %arg1[%c0, %c0_0, %c0_1] : memref<8x256x64xf32, #tpu.memory_space<vmem>>, vector<8x256x64xf32>
    %1 = arith.truncf %0 : vector<8x256x64xf32> to vector<8x256x64xbf16>
    %c0_2 = arith.constant 0 : index
    %c0_3 = arith.constant 0 : index
    %c0_4 = arith.constant 0 : index
    %2 = vector.load %arg3[%c0_2, %c0_3, %c0_4] : memref<2x1x256xf32, #tpu.memory_space<vmem>>, vector<1x1x256xf32>
    %3 = vector.shape_cast %2 : vector<1x1x256xf32> to vector<1x256xf32>
    %4 = arith.truncf %3 : vector<1x256xf32> to vector<1x256xbf16>
    %5 = vector.shape_cast %4 : vector<1x256xbf16> to vector<1x1x256xbf16>
    %6 = vector.shape_cast %5 : vector<1x1x256xbf16> to vector<1x1x256xbf16>
    %7 = vector.broadcast %6 : vector<1x1x256xbf16> to vector<8x1x256xbf16>
    %cst = arith.constant dense<0.000000e+00> : vector<8x1x64xf32>
    %8 = tpu.matmul %7, %1, %cst {dimension_numbers = #tpu.dot_dimension_numbers<[2], [1], [1], [2], [0, 0, 0, 1, 1, 2], [0], [0]>} : vector<8x1x256xbf16>, vector<8x256x64xbf16>, vector<8x1x64xf32> -> vector<8x1x64xf32>
    %9 = vector.shape_cast %8 : vector<8x1x64xf32> to vector<8x64xf32>
    %c0_5 = arith.constant 0 : index
    %10 = memref.load %arg8[%c0_5] : memref<2xf32, #tpu.memory_space<smem>>
    %11 = vector.broadcast %10 : f32 to vector<8x64xf32>
    %12 = arith.addf %9, %11 : vector<8x64xf32>
    %cst_6 = arith.constant 0.000000e+00 : f32
    %13 = vector.broadcast %cst_6 : f32 to vector<8x64xf32>
    %14 = arith.maximumf %12, %13 : vector<8x64xf32>
    %15 = arith.truncf %14 : vector<8x64xf32> to vector<8x64xbf16>
    %c0_7 = arith.constant 0 : index
    %c0_8 = arith.constant 0 : index
    %c0_9 = arith.constant 0 : index
    %16 = vector.load %arg4[%c0_7, %c0_8, %c0_9] : memref<2x64x64xf32, #tpu.memory_space<vmem>>, vector<1x64x64xf32>
    %17 = vector.shape_cast %16 : vector<1x64x64xf32> to vector<64x64xf32>
    %18 = arith.truncf %17 : vector<64x64xf32> to vector<64x64xbf16>
    %cst_10 = arith.constant dense<0.000000e+00> : vector<8x64xf32>
    %19 = tpu.matmul %15, %18, %cst_10 {dimension_numbers = #tpu.dot_dimension_numbers<[1], [0], [0], [1], [0, 0, 1, 1], [], []>} : vector<8x64xbf16>, vector<64x64xbf16>, vector<8x64xf32> -> vector<8x64xf32>
    %cst_11 = arith.constant 0.000000e+00 : f32
    %20 = vector.broadcast %cst_11 : f32 to vector<8x64xf32>
    %21 = arith.maximumf %19, %20 : vector<8x64xf32>
    %22 = arith.truncf %21 : vector<8x64xf32> to vector<8x64xbf16>
    %c0_12 = arith.constant 0 : index
    %c0_13 = arith.constant 0 : index
    %c0_14 = arith.constant 0 : index
    %23 = vector.load %arg5[%c0_12, %c0_13, %c0_14] : memref<2x64x32xf32, #tpu.memory_space<vmem>>, vector<1x64x32xf32>
    %24 = vector.shape_cast %23 : vector<1x64x32xf32> to vector<64x32xf32>
    %25 = arith.truncf %24 : vector<64x32xf32> to vector<64x32xbf16>
    %cst_15 = arith.constant dense<0.000000e+00> : vector<8x32xf32>
    %26 = tpu.matmul %22, %25, %cst_15 {dimension_numbers = #tpu.dot_dimension_numbers<[1], [0], [0], [1], [0, 0, 1, 1], [], []>} : vector<8x64xbf16>, vector<64x32xbf16>, vector<8x32xf32> -> vector<8x32xf32>
    %cst_16 = arith.constant dense<0.000000e+00> : vector<8xf32>
    %27 = vector.multi_reduction <add>, %26, %cst_16 [1] : vector<8x32xf32> to vector<8xf32>
    %28 = vector.shape_cast %27 : vector<8xf32> to vector<8x1xf32>
    %cst_17 = arith.constant 3.200000e+01 : f32
    %29 = vector.broadcast %cst_17 : f32 to vector<8x1xf32>
    %30 = arith.divf %28, %29 : vector<8x1xf32>
    %31 = vector.broadcast %30 : vector<8x1xf32> to vector<8x32xf32>
    %32 = arith.subf %26, %31 : vector<8x32xf32>
    %33 = arith.mulf %32, %32 : vector<8x32xf32>
    %cst_18 = arith.constant dense<0.000000e+00> : vector<8xf32>
    %34 = vector.multi_reduction <add>, %33, %cst_18 [1] : vector<8x32xf32> to vector<8xf32>
    %35 = vector.shape_cast %34 : vector<8xf32> to vector<8x1xf32>
    %cst_19 = arith.constant 3.200000e+01 : f32
    %36 = vector.broadcast %cst_19 : f32 to vector<8x1xf32>
    %37 = arith.divf %35, %36 : vector<8x1xf32>
    %38 = vector.broadcast %30 : vector<8x1xf32> to vector<8x32xf32>
    %39 = arith.subf %26, %38 : vector<8x32xf32>
    %cst_20 = arith.constant 9.99999974E-6 : f32
    %40 = vector.broadcast %cst_20 : f32 to vector<8x1xf32>
    %41 = arith.addf %37, %40 : vector<8x1xf32>
    %42 = math.rsqrt %41 : vector<8x1xf32>
    %43 = vector.broadcast %42 : vector<8x1xf32> to vector<8x32xf32>
    %44 = arith.mulf %39, %43 : vector<8x32xf32>
    %c0_21 = arith.constant 0 : index
    %c0_22 = arith.constant 0 : index
    %c0_23 = arith.constant 0 : index
    %45 = vector.load %arg6[%c0_21, %c0_22, %c0_23] : memref<2x1x32xf32, #tpu.memory_space<vmem>>, vector<1x1x32xf32>
    %46 = vector.shape_cast %45 : vector<1x1x32xf32> to vector<1x32xf32>
    %47 = vector.broadcast %46 : vector<1x32xf32> to vector<8x32xf32>
    %48 = arith.mulf %44, %47 : vector<8x32xf32>
    %c0_24 = arith.constant 0 : index
    %c0_25 = arith.constant 0 : index
    %c0_26 = arith.constant 0 : index
    %49 = vector.load %arg7[%c0_24, %c0_25, %c0_26] : memref<2x1x32xf32, #tpu.memory_space<vmem>>, vector<1x1x32xf32>
    %50 = vector.shape_cast %49 : vector<1x1x32xf32> to vector<1x32xf32>
    %51 = vector.broadcast %50 : vector<1x32xf32> to vector<8x32xf32>
    %52 = arith.addf %48, %51 : vector<8x32xf32>
    %53 = vector.shape_cast %52 : vector<8x32xf32> to vector<2x4x32xf32>
    %54 = arith.truncf %53 : vector<2x4x32xf32> to vector<2x4x32xbf16>
    %c0_27 = arith.constant 0 : index
    %c0_28 = arith.constant 0 : index
    %c0_29 = arith.constant 0 : index
    %55 = vector.load %arg2[%c0_27, %c0_28, %c0_29] : memref<8x256x64xf32, #tpu.memory_space<vmem>>, vector<8x256x64xf32>
    %56 = arith.truncf %55 : vector<8x256x64xf32> to vector<8x256x64xbf16>
    %c1 = arith.constant 1 : index
    %c0_30 = arith.constant 0 : index
    %c0_31 = arith.constant 0 : index
    %57 = vector.load %arg3[%c1, %c0_30, %c0_31] : memref<2x1x256xf32, #tpu.memory_space<vmem>>, vector<1x1x256xf32>
    %58 = vector.shape_cast %57 : vector<1x1x256xf32> to vector<1x256xf32>
    %59 = arith.truncf %58 : vector<1x256xf32> to vector<1x256xbf16>
    %60 = vector.shape_cast %59 : vector<1x256xbf16> to vector<1x1x256xbf16>
    %61 = vector.shape_cast %60 : vector<1x1x256xbf16> to vector<1x1x256xbf16>
    %62 = vector.broadcast %61 : vector<1x1x256xbf16> to vector<8x1x256xbf16>
    %cst_32 = arith.constant dense<0.000000e+00> : vector<8x1x64xf32>
    %63 = tpu.matmul %62, %56, %cst_32 {dimension_numbers = #tpu.dot_dimension_numbers<[2], [1], [1], [2], [0, 0, 0, 1, 1, 2], [0], [0]>} : vector<8x1x256xbf16>, vector<8x256x64xbf16>, vector<8x1x64xf32> -> vector<8x1x64xf32>
    %64 = vector.shape_cast %63 : vector<8x1x64xf32> to vector<8x64xf32>
    %c1_33 = arith.constant 1 : index
    %65 = memref.load %arg8[%c1_33] : memref<2xf32, #tpu.memory_space<smem>>
    %66 = vector.broadcast %65 : f32 to vector<8x64xf32>
    %67 = arith.addf %64, %66 : vector<8x64xf32>
    %cst_34 = arith.constant 0.000000e+00 : f32
    %68 = vector.broadcast %cst_34 : f32 to vector<8x64xf32>
    %69 = arith.maximumf %67, %68 : vector<8x64xf32>
    %70 = arith.truncf %69 : vector<8x64xf32> to vector<8x64xbf16>
    %c1_35 = arith.constant 1 : index
    %c0_36 = arith.constant 0 : index
    %c0_37 = arith.constant 0 : index
    %71 = vector.load %arg4[%c1_35, %c0_36, %c0_37] : memref<2x64x64xf32, #tpu.memory_space<vmem>>, vector<1x64x64xf32>
    %72 = vector.shape_cast %71 : vector<1x64x64xf32> to vector<64x64xf32>
    %73 = arith.truncf %72 : vector<64x64xf32> to vector<64x64xbf16>
    %cst_38 = arith.constant dense<0.000000e+00> : vector<8x64xf32>
    %74 = tpu.matmul %70, %73, %cst_38 {dimension_numbers = #tpu.dot_dimension_numbers<[1], [0], [0], [1], [0, 0, 1, 1], [], []>} : vector<8x64xbf16>, vector<64x64xbf16>, vector<8x64xf32> -> vector<8x64xf32>
    %cst_39 = arith.constant 0.000000e+00 : f32
    %75 = vector.broadcast %cst_39 : f32 to vector<8x64xf32>
    %76 = arith.maximumf %74, %75 : vector<8x64xf32>
    %77 = arith.truncf %76 : vector<8x64xf32> to vector<8x64xbf16>
    %c1_40 = arith.constant 1 : index
    %c0_41 = arith.constant 0 : index
    %c0_42 = arith.constant 0 : index
    %78 = vector.load %arg5[%c1_40, %c0_41, %c0_42] : memref<2x64x32xf32, #tpu.memory_space<vmem>>, vector<1x64x32xf32>
    %79 = vector.shape_cast %78 : vector<1x64x32xf32> to vector<64x32xf32>
    %80 = arith.truncf %79 : vector<64x32xf32> to vector<64x32xbf16>
    %cst_43 = arith.constant dense<0.000000e+00> : vector<8x32xf32>
    %81 = tpu.matmul %77, %80, %cst_43 {dimension_numbers = #tpu.dot_dimension_numbers<[1], [0], [0], [1], [0, 0, 1, 1], [], []>} : vector<8x64xbf16>, vector<64x32xbf16>, vector<8x32xf32> -> vector<8x32xf32>
    %cst_44 = arith.constant dense<0.000000e+00> : vector<8xf32>
    %82 = vector.multi_reduction <add>, %81, %cst_44 [1] : vector<8x32xf32> to vector<8xf32>
    %83 = vector.shape_cast %82 : vector<8xf32> to vector<8x1xf32>
    %cst_45 = arith.constant 3.200000e+01 : f32
    %84 = vector.broadcast %cst_45 : f32 to vector<8x1xf32>
    %85 = arith.divf %83, %84 : vector<8x1xf32>
    %86 = vector.broadcast %85 : vector<8x1xf32> to vector<8x32xf32>
    %87 = arith.subf %81, %86 : vector<8x32xf32>
    %88 = arith.mulf %87, %87 : vector<8x32xf32>
    %cst_46 = arith.constant dense<0.000000e+00> : vector<8xf32>
    %89 = vector.multi_reduction <add>, %88, %cst_46 [1] : vector<8x32xf32> to vector<8xf32>
    %90 = vector.shape_cast %89 : vector<8xf32> to vector<8x1xf32>
    %cst_47 = arith.constant 3.200000e+01 : f32
    %91 = vector.broadcast %cst_47 : f32 to vector<8x1xf32>
    %92 = arith.divf %90, %91 : vector<8x1xf32>
    %93 = vector.broadcast %85 : vector<8x1xf32> to vector<8x32xf32>
    %94 = arith.subf %81, %93 : vector<8x32xf32>
    %cst_48 = arith.constant 9.99999974E-6 : f32
    %95 = vector.broadcast %cst_48 : f32 to vector<8x1xf32>
    %96 = arith.addf %92, %95 : vector<8x1xf32>
    %97 = math.rsqrt %96 : vector<8x1xf32>
    %98 = vector.broadcast %97 : vector<8x1xf32> to vector<8x32xf32>
    %99 = arith.mulf %94, %98 : vector<8x32xf32>
    %c1_49 = arith.constant 1 : index
    %c0_50 = arith.constant 0 : index
    %c0_51 = arith.constant 0 : index
    %100 = vector.load %arg6[%c1_49, %c0_50, %c0_51] : memref<2x1x32xf32, #tpu.memory_space<vmem>>, vector<1x1x32xf32>
    %101 = vector.shape_cast %100 : vector<1x1x32xf32> to vector<1x32xf32>
    %102 = vector.broadcast %101 : vector<1x32xf32> to vector<8x32xf32>
    %103 = arith.mulf %99, %102 : vector<8x32xf32>
    %c1_52 = arith.constant 1 : index
    %c0_53 = arith.constant 0 : index
    %c0_54 = arith.constant 0 : index
    %104 = vector.load %arg7[%c1_52, %c0_53, %c0_54] : memref<2x1x32xf32, #tpu.memory_space<vmem>>, vector<1x1x32xf32>
    %105 = vector.shape_cast %104 : vector<1x1x32xf32> to vector<1x32xf32>
    %106 = vector.broadcast %105 : vector<1x32xf32> to vector<8x32xf32>
    %107 = arith.addf %103, %106 : vector<8x32xf32>
    %108 = vector.shape_cast %107 : vector<8x32xf32> to vector<2x4x32xf32>
    %109 = arith.truncf %108 : vector<2x4x32xf32> to vector<2x4x32xbf16>
    %c0_55 = arith.constant 0 : index
    %110 = memref.load %arg9[%c0_55] : memref<1xf32, #tpu.memory_space<smem>>
    %cst_56 = arith.constant dense<0.000000e+00> : vector<2x4x4xf32>
    %111 = tpu.matmul %54, %109, %cst_56 {dimension_numbers = #tpu.dot_dimension_numbers<[2], [2], [1], [1], [0, 0, 0, 1, 1, 1], [0], [0]>} : vector<2x4x32xbf16>, vector<2x4x32xbf16>, vector<2x4x4xf32> -> vector<2x4x4xf32>
    %cst_57 = arith.constant dense<0.000000e+00> : vector<2x4x4xf32>
    %112 = tpu.matmul %109, %54, %cst_57 {dimension_numbers = #tpu.dot_dimension_numbers<[2], [2], [1], [1], [0, 0, 0, 1, 1, 1], [0], [0]>} : vector<2x4x32xbf16>, vector<2x4x32xbf16>, vector<2x4x4xf32> -> vector<2x4x4xf32>
    %113 = vector.broadcast %110 : f32 to vector<2x4x4xf32>
    %114 = arith.mulf %113, %111 : vector<2x4x4xf32>
    %c0_58 = arith.constant 0 : index
    %c0_59 = arith.constant 0 : index
    %c0_60 = arith.constant 0 : index
    %115 = vector.load %arg10[%c0_58, %c0_59, %c0_60] : memref<2x4x4xf32, #tpu.memory_space<vmem>>, vector<2x4x4xf32>
    tpu.vector_store %arg10[%c0_58, %c0_59, %c0_60], %114 {strides = array<i32>} : memref<2x4x4xf32, #tpu.memory_space<vmem>>, vector<2x4x4xf32>,
    %116 = vector.broadcast %110 : f32 to vector<2x4x4xf32>
    %117 = arith.mulf %116, %112 : vector<2x4x4xf32>
    %c0_61 = arith.constant 0 : index
    %c0_62 = arith.constant 0 : index
    %c0_63 = arith.constant 0 : index
    %118 = vector.load %arg11[%c0_61, %c0_62, %c0_63] : memref<2x4x4xf32, #tpu.memory_space<vmem>>, vector<2x4x4xf32>
    tpu.vector_store %arg11[%c0_61, %c0_62, %c0_63], %117 {strides = array<i32>} : memref<2x4x4xf32, #tpu.memory_space<vmem>>, vector<2x4x4xf32>,
    return
  }
  func.func @transform_0(%arg0: i32) -> (i32, i32, i32) {
    %c0_i32 = arith.constant 0 : i32
    %c0_i32_0 = arith.constant 0 : i32
    %c0_i32_1 = arith.constant 0 : i32
    %c0_i32_2 = arith.constant 0 : i32
    return %c0_i32, %c0_i32_0, %c0_i32_1 : i32, i32, i32
  }
  func.func @transform_1(%arg0: i32) -> (i32, i32, i32) {
    %c0_i32 = arith.constant 0 : i32
    %c0_i32_0 = arith.constant 0 : i32
    %c0_i32_1 = arith.constant 0 : i32
    %c0_i32_2 = arith.constant 0 : i32
    return %c0_i32, %c0_i32_0, %c0_i32_1 : i32, i32, i32
  }
  func.func @transform_2(%arg0: i32) -> (i32, i32, i32) {
    %c0_i32 = arith.constant 0 : i32
    %c0_i32_0 = arith.constant 0 : i32
    %c0_i32_1 = arith.constant 0 : i32
    %c0_i32_2 = arith.constant 0 : i32
    return %c0_i32, %c0_i32_0, %c0_i32_1 : i32, i32, i32
  }
  func.func @transform_3(%arg0: i32) -> (i32, i32, i32) {
    %c0_i32 = arith.constant 0 : i32
    %c0_i32_0 = arith.constant 0 : i32
    %c0_i32_1 = arith.constant 0 : i32
    %c0_i32_2 = arith.constant 0 : i32
    return %c0_i32, %c0_i32_0, %c0_i32_1 : i32, i32, i32
  }
  func.func @transform_4(%arg0: i32) -> (i32, i32, i32) {
    %c0_i32 = arith.constant 0 : i32
    %c0_i32_0 = arith.constant 0 : i32
    %c0_i32_1 = arith.constant 0 : i32
    %c0_i32_2 = arith.constant 0 : i32
    return %c0_i32, %c0_i32_0, %c0_i32_1 : i32, i32, i32
  }
  func.func @transform_5(%arg0: i32) -> (i32, i32, i32) {
    %c0_i32 = arith.constant 0 : i32
    %c0_i32_0 = arith.constant 0 : i32
    %c0_i32_1 = arith.constant 0 : i32
    %c0_i32_2 = arith.constant 0 : i32
    return %c0_i32, %c0_i32_0, %c0_i32_1 : i32, i32, i32
  }
  func.func @transform_6(%arg0: i32) -> (i32, i32, i32) {
    %c0_i32 = arith.constant 0 : i32
    %c0_i32_0 = arith.constant 0 : i32
    %c0_i32_1 = arith.constant 0 : i32
    %c0_i32_2 = arith.constant 0 : i32
    return %c0_i32, %c0_i32_0, %c0_i32_1 : i32, i32, i32
  }
  func.func @transform_7(%arg0: i32) -> i32 {
    %c0_i32 = arith.constant 0 : i32
    %c0_i32_0 = arith.constant 0 : i32
    return %c0_i32 : i32
  }
  func.func @transform_8(%arg0: i32) -> i32 {
    %c0_i32 = arith.constant 0 : i32
    %c0_i32_0 = arith.constant 0 : i32
    return %c0_i32 : i32
  }
  func.func @transform_9(%arg0: i32) -> (i32, i32, i32) {
    %c0_i32 = arith.constant 0 : i32
    %c0_i32_0 = arith.constant 0 : i32
    %c0_i32_1 = arith.constant 0 : i32
    %c0_i32_2 = arith.constant 0 : i32
    return %c0_i32, %c0_i32_0, %c0_i32_1 : i32, i32, i32
  }
  func.func @transform_10(%arg0: i32) -> (i32, i32, i32) {
    %c0_i32 = arith.constant 0 : i32
    %c0_i32_0 = arith.constant 0 : i32
    %c0_i32_1 = arith.constant 0 : i32
    %c0_i32_2 = arith.constant 0 : i32
    return %c0_i32, %c0_i32_0, %c0_i32_1 : i32, i32, i32
  }
}

</mosaic_0001>

<bundles_post_ra>
// kernel: tpu_custom_call.1
= control target key start
LH: loop header
LB: loop body
LE: loop exit
PB: predicated region body
PF: predicated region fallthrough
CT: control target
= control target key end

     0   :  { %17 = vsyncpa [#allocation5], 0  ;;  %s4549_s0 = inlined_call_operand.vmem [shape: f32[8,256,64], index: 0, kind: input, shape index: {}]   ;;  %s4550_s1 = inlined_call_operand.vmem [shape: f32[8,256,64], index: 1, kind: input, shape index: {}]   ;;  %s4551_s2 = inlined_call_operand.vmem [shape: f32[2,1,256], index: 2, kind: input, shape index: {}]   ;;  %s4552_s3 = inlined_call_operand.vmem [shape: f32[2,64,64], index: 3, kind: input, shape index: {}]   ;;  %s4553_s4 = inlined_call_operand.vmem [shape: f32[2,64,32], index: 4, kind: input, shape index: {}]   ;;  %s4554_s5 = inlined_call_operand.vmem [shape: f32[2,1,32], index: 5, kind: input, shape index: {}]   ;;  %s4555_s6 = inlined_call_operand.vmem [shape: f32[2,1,32], index: 6, kind: input, shape index: {}]   ;;  %s4556_s7 = inlined_call_operand.vmem [shape: f32[2], index: 7, kind: input, shape index: {}]   ;;  %s4557_s8 = inlined_call_operand.<no memory space> [shape: f32[1], index: 8, kind: input, shape index: {}]   ;;  %s4558_s9 = inlined_call_operand.hbm [shape: f32[2,4,4], index: 9, kind: output, shape index: {0}]   ;;  %s4559_s10 = inlined_call_operand.hbm [shape: f32[2,4,4], index: 10, kind: output, shape index: {1}]  }
   0x1   :  { %18 = vsyncpa [#allocation4], 0 }
   0x2   :  { %19 = vsyncpa [#allocation8], 0  ;;  %s40_s15 = sshll.u32 %s4556_s7, 4  ;;  %s41_s15 = int_to_ptr.vmem [resolvable:$true] %s40_s15 }
   0x3   :  { %s2619_s16 = scalar_lea.vmem %s41_s15, 16  ;;  %p2624_p1 = scmp.lt.s32.totalorder %s41_s15, %s41_s15 }
   0x4   :  { %p2620_p0 = scmp.ne.s32.totalorder %s41_s15, %s2619_s16  ;;  %p2625_p2 = scmp.lt.s32.totalorder %s2619_s16, %s2619_s16 }
   0x6   :  { %p2626_p3 = por %p2625_p2, %p2624_p1 }
   0x8   :  { %p2627_p4 = pnand %p2626_p3, %p2620_p0 }
   0xa   :  { %2630 = shalt.err (!%p2627_p4)
}
   0xb   :  { %s2677_s17 = smov [#allocation3]  }
   0xc   :  { %43 = dma.vmem_to_smem %s41_s15, 16, %s2677_s17, [#allocation5]  }
   0xd   :  { %2671 = dma.done.wait [#allocation5], 16  }
   0xe   :  { %2672 = vsyncadd [#allocation5], 4294967280 }
   0xf   :  { %49 = sfence }
  0x10   :  { %v81_v0 = vld [vmem:[%s4549_s0 + $0xf0] sm:$0xff]  ;;  %v82_v1 = vld [vmem:[%s4549_s0 + $0xf8] sm:$0xff]  ;;  %v79_v11 = vld [vmem:[%s4549_s0 + $0xe0] sm:$0xff]  ;;  %v437_v47 = vlaneseq  ;;  %vm2679_vm0 = vmmov 0   ;;  %s769_s25 = sld [smem:[#allocation3]]  ;;  %vm824_vm1 = vcmask 1041409  }
  0x11   :  { %v113_v2 = vld [vmem:[%s4549_s0 + $0x1f0] sm:$0xff]  ;;  %v322_v3 = vpack.c.bf16 %v82_v1, %v81_v0  ;;  %v114_v4 = vld [vmem:[%s4549_s0 + $0x1f8] sm:$0xff]  ;;  %v80_v13 = vld [vmem:[%s4549_s0 + $0xe8] sm:$0xff]  ;;  %vm827_vm2 = vcmask 1042434   ;;  %vm830_vm3 = vcmask 1043459   ;;  %vm833_vm4 = vcmask 1044484  }
  0x12   :  { %v65_v5 = vld [vmem:[%s4549_s0 + $0x70] sm:$0xff]  ;;  %v66_v6 = vld [vmem:[%s4549_s0 + $0x78] sm:$0xff]  ;;  %v338_v7 = vpack.c.bf16 %v114_v4, %v113_v2  ;;  %v111_v14 = vld [vmem:[%s4549_s0 + $0x1e0] sm:$0xff]  ;;  %v321_v16 = vpack.c.bf16 %v80_v13, %v79_v11  ;;  %v2868_v61 = vshrl.u32 %v437_v47, 7  ;;  %vm836_vm5 = vcmask 1045509   ;;  %s2129_s24 = sld [smem:[#allocation3 + $0x1]] }
  0x13   :  { %v314_v8 = vpack.c.bf16 %v66_v6, %v65_v5  ;;  %v97_v9 = vld [vmem:[%s4549_s0 + $0x170] sm:$0xff]  ;;  %v98_v10 = vld [vmem:[%s4549_s0 + $0x178] sm:$0xff]  ;;  %2156 = vmatprep.subr.bf16.mxu0 %v322_v3  ;;  %v112_v15 = vld [vmem:[%s4549_s0 + $0x1e8] sm:$0xff]  ;;  %vm839_vm6 = vcmask 1046534   ;;  %vm842_vm7 = vcmask 1047559   ;;  %vm845_vm8 = vcmask 523264  }
  0x14   :  { %v330_v12 = vpack.c.bf16 %v98_v10, %v97_v9  ;;  %2178 = vmatprep.subr.bf16.mxu1 %v338_v7  ;;  %v337_v17 = vpack.c.bf16 %v112_v15, %v111_v14  ;;  %v63_v18 = vld [vmem:[%s4549_s0 + $0x60] sm:$0xff]  ;;  %v64_v19 = vld [vmem:[%s4549_s0 + $0x68] sm:$0xff]  ;;  %v77_v23 = vld [vmem:[%s4549_s0 + $0xd0] sm:$0xff]  ;;  %v443_v10 = vsub.s32 1, %v2868_v61  ;;  %vm946_vm9 = vcmask 261120   ;;  %s2680_s19 = smov [#allocation6]  }
  0x15   :  { %2157 = vmatpush3.bf16.msra.mxu0 %v314_v8  ;;  %v95_v20 = vld [vmem:[%s4549_s0 + $0x160] sm:$0xff]  ;;  %v313_v21 = vpack.c.bf16 %v64_v19, %v63_v18  ;;  %v96_v22 = vld [vmem:[%s4549_s0 + $0x168] sm:$0xff]  ;;  %v78_v24 = vld [vmem:[%s4549_s0 + $0xd8] sm:$0xff]  ;;  %s2096_s20 = sshll.u32 %s2680_s19, 4  ;;  %vm2084_vm10 = vcmask 27648   ;;  %s2097_s20 = int_to_ptr.vmem [resolvable:$true] %s2096_s20 }
  0x16   :  { %2179 = vmatpush3.bf16.msra.mxu1 %v330_v12  ;;  %2158 = vmatprep.subr.bf16.mxu0 %v321_v16  ;;  %v329_v25 = vpack.c.bf16 %v96_v22, %v95_v20  ;;  %v320_v26 = vpack.c.bf16 %v78_v24, %v77_v23  ;;  %v109_v27 = vld [vmem:[%s4549_s0 + $0x1d0] sm:$0xff]  ;;  %v110_v28 = vld [vmem:[%s4549_s0 + $0x1d8] sm:$0xff]  ;;  %v75_v35 = vld [vmem:[%s4549_s0 + $0xc0] sm:$0xff]  ;;  %s2631_s21 = scalar_lea.vmem %s2097_s20, 128  ;;  %p2636_p6 = scmp.lt.s32.totalorder %s2097_s20, %s2097_s20 }
  0x17   :  { %2180 = vmatprep.subr.bf16.mxu1 %v337_v17  ;;  %v61_v29 = vld [vmem:[%s4549_s0 + $0x50] sm:$0xff]  ;;  %v336_v30 = vpack.c.bf16 %v110_v28, %v109_v27  ;;  %v62_v31 = vld [vmem:[%s4549_s0 + $0x58] sm:$0xff]  ;;  %v76_v36 = vld [vmem:[%s4549_s0 + $0xc8] sm:$0xff]  ;;  %v439_v27 = vsub.s32 0, %v2868_v61  ;;  %p2632_p5 = scmp.ne.s32.totalorder %s2097_s20, %s2631_s21  ;;  %p2637_p7 = scmp.lt.s32.totalorder %s2631_s21, %s2631_s21 }
  0x18   :  { %v93_v32 = vld [vmem:[%s4549_s0 + $0x150] sm:$0xff]  ;;  %v94_v33 = vld [vmem:[%s4549_s0 + $0x158] sm:$0xff]  ;;  %v312_v34 = vpack.c.bf16 %v62_v31, %v61_v29  ;;  %v107_v37 = vld [vmem:[%s4549_s0 + $0x1c0] sm:$0xff]  ;;  %v319_v39 = vpack.c.bf16 %v76_v36, %v75_v35 }
  0x19   :  { %2159 = vmatpush3.bf16.msra.mxu0 %v313_v21  ;;  %v328_v38 = vpack.c.bf16 %v94_v33, %v93_v32  ;;  %v108_v40 = vld [vmem:[%s4549_s0 + $0x1c8] sm:$0xff]  ;;  %v59_v41 = vld [vmem:[%s4549_s0 + $0x40] sm:$0xff]  ;;  %v73_v46 = vld [vmem:[%s4549_s0 + $0xb0] sm:$0xff]  ;;  %p2638_p8 = por %p2637_p7, %p2636_p6 }
  0x1a   :  { %2181 = vmatpush3.bf16.msra.mxu1 %v329_v25  ;;  %2160 = vmatprep.subr.bf16.mxu0 %v320_v26  ;;  %v60_v42 = vld [vmem:[%s4549_s0 + $0x48] sm:$0xff]  ;;  %v335_v43 = vpack.c.bf16 %v108_v40, %v107_v37  ;;  %v91_v44 = vld [vmem:[%s4549_s0 + $0x140] sm:$0xff]  ;;  %v74_v48 = vld [vmem:[%s4549_s0 + $0xb8] sm:$0xff] }
  0x1b   :  { %2182 = vmatprep.subr.bf16.mxu1 %v336_v30  ;;  %v92_v45 = vld [vmem:[%s4549_s0 + $0x148] sm:$0xff]  ;;  %v105_v49 = vld [vmem:[%s4549_s0 + $0x1b0] sm:$0xff]  ;;  %v106_v50 = vld [vmem:[%s4549_s0 + $0x1b8] sm:$0xff]  ;;  %v311_v51 = vpack.c.bf16 %v60_v42, %v59_v41  ;;  %v318_v53 = vpack.c.bf16 %v74_v48, %v73_v46  ;;  %p2639_p9 = pnand %p2638_p8, %p2632_p5 }
  0x1c   :  { %v327_v52 = vpack.c.bf16 %v92_v45, %v91_v44  ;;  %v57_v54 = vld [vmem:[%s4549_s0 + $0x30] sm:$0xff]  ;;  %v58_v55 = vld [vmem:[%s4549_s0 + $0x38] sm:$0xff]  ;;  %v334_v57 = vpack.c.bf16 %v106_v50, %v105_v49  ;;  %v71_v59 = vld [vmem:[%s4549_s0 + $0xa0] sm:$0xff] }
  0x1d   :  { %2161 = vmatpush3.bf16.msra.mxu0 %v312_v34  ;;  %v89_v56 = vld [vmem:[%s4549_s0 + $0x130] sm:$0xff]  ;;  %v90_v58 = vld [vmem:[%s4549_s0 + $0x138] sm:$0xff]  ;;  %v72_v60 = vld [vmem:[%s4549_s0 + $0xa8] sm:$0xff]  ;;  %v310_v0 = vpack.c.bf16 %v58_v55, %v57_v54 }
  0x1e   :  { %2183 = vmatpush3.bf16.msra.mxu1 %v328_v38  ;;  %2162 = vmatprep.subr.bf16.mxu0 %v319_v39  ;;  %v103_v62 = vld [vmem:[%s4549_s0 + $0x1a0] sm:$0xff]  ;;  %v104_v63 = vld [vmem:[%s4549_s0 + $0x1a8] sm:$0xff]  ;;  %v326_v1 = vpack.c.bf16 %v90_v58, %v89_v56  ;;  %v317_v2 = vpack.c.bf16 %v72_v60, %v71_v59  ;;  %v69_v8 = vld [vmem:[%s4549_s0 + $0x90] sm:$0xff] }
  0x1f   :  { %2184 = vmatprep.subr.bf16.mxu1 %v335_v43  ;;  %v55_v3 = vld [vmem:[%s4549_s0 + $0x20] sm:$0xff]  ;;  %v56_v4 = vld [vmem:[%s4549_s0 + $0x28] sm:$0xff]  ;;  %v333_v6 = vpack.c.bf16 %v104_v63, %v103_v62  ;;  %v70_v9 = vld [vmem:[%s4549_s0 + $0x98] sm:$0xff] }
  0x20   :  { %v87_v5 = vld [vmem:[%s4549_s0 + $0x120] sm:$0xff]  ;;  %v88_v7 = vld [vmem:[%s4549_s0 + $0x128] sm:$0xff]  ;;  %v101_v11 = vld [vmem:[%s4549_s0 + $0x190] sm:$0xff]  ;;  %v309_v13 = vpack.c.bf16 %v56_v4, %v55_v3  ;;  %v316_v16 = vpack.c.bf16 %v70_v9, %v69_v8 }
  0x21   :  { %2163 = vmatpush3.bf16.msra.mxu0 %v311_v51  ;;  %v102_v12 = vld [vmem:[%s4549_s0 + $0x198] sm:$0xff]  ;;  %v53_v14 = vld [vmem:[%s4549_s0 + $0x10] sm:$0xff]  ;;  %v325_v15 = vpack.c.bf16 %v88_v7, %v87_v5  ;;  %v435_v19 = vld [vmem:[%s4551_s2] sm:$0x3] }
  0x22   :  { %2185 = vmatpush3.bf16.msra.mxu1 %v327_v52  ;;  %2164 = vmatprep.subr.bf16.mxu0 %v318_v53  ;;  %v54_v17 = vld [vmem:[%s4549_s0 + $0x18] sm:$0xff]  ;;  %v85_v18 = vld [vmem:[%s4549_s0 + $0x110] sm:$0xff]  ;;  %v332_v20 = vpack.c.bf16 %v102_v12, %v101_v11  ;;  %v67_v22 = vld [vmem:[%s4549_s0 + $0x80] sm:$0xff]  ;;  %v444_v24 = vrot.slane %v435_v19, %v443_v10  ;;  %v440_v39 = vrot.slane %v435_v19, %v439_v27 }
  0x23   :  { %2186 = vmatprep.subr.bf16.mxu1 %v334_v57  ;;  %v86_v21 = vld [vmem:[%s4549_s0 + $0x118] sm:$0xff]  ;;  %v68_v23 = vld [vmem:[%s4549_s0 + $0x88] sm:$0xff]  ;;  %v99_v25 = vld [vmem:[%s4549_s0 + $0x180] sm:$0xff]  ;;  %v308_v28 = vpack.c.bf16 %v54_v17, %v53_v14 }
  0x24   :  { %v100_v26 = vld [vmem:[%s4549_s0 + $0x188] sm:$0xff]  ;;  %v2931_v29 = vpack.c.bf16 %v444_v24, %v444_v24  ;;  %v324_v30 = vpack.c.bf16 %v86_v21, %v85_v18  ;;  %v315_v31 = vpack.c.bf16 %v68_v23, %v67_v22  ;;  %v51_v32 = vld [vmem:[%s4549_s0] sm:$0xff]  ;;  %v145_v37 = vld [vmem:[%s4549_s0 + $0x2f0] sm:$0xff]  ;;  %v2979_v52 = vpack.c.bf16 %v440_v39, %v440_v39 }
  0x25   :  { %2165 = vmatpush3.bf16.msra.mxu0 %v310_v0  ;;  %v52_v33 = vld [vmem:[%s4549_s0 + $0x8] sm:$0xff]  ;;  %v83_v34 = vld [vmem:[%s4549_s0 + $0x100] sm:$0xff]  ;;  %v331_v35 = vpack.c.bf16 %v100_v26, %v99_v25  ;;  %v146_v38 = vld [vmem:[%s4549_s0 + $0x2f8] sm:$0xff] }
  0x26   :  { %2187 = vmatpush3.bf16.msra.mxu1 %v326_v1  ;;  %2166 = vmatprep.subr.bf16.mxu0 %v317_v2  ;;  %v84_v36 = vld [vmem:[%s4549_s0 + $0x108] sm:$0xff]  ;;  %v177_v40 = vld [vmem:[%s4549_s0 + $0x3f0] sm:$0xff]  ;;  %v178_v41 = vld [vmem:[%s4549_s0 + $0x3f8] sm:$0xff]  ;;  %v307_v42 = vpack.c.bf16 %v52_v33, %v51_v32  ;;  %v354_v44 = vpack.c.bf16 %v146_v38, %v145_v37 }
  0x27   :  { %2188 = vmatprep.subr.bf16.mxu1 %v333_v6  ;;  %481 = vmatprep.mubr.bf16.mxu0 %v2931_v29  ;;  %v323_v43 = vpack.c.bf16 %v84_v36, %v83_v34  ;;  %v129_v45 = vld [vmem:[%s4549_s0 + $0x270] sm:$0xff]  ;;  %v130_v46 = vld [vmem:[%s4549_s0 + $0x278] sm:$0xff]  ;;  %v370_v48 = vpack.c.bf16 %v178_v41, %v177_v40  ;;  %v143_v50 = vld [vmem:[%s4549_s0 + $0x2e0] sm:$0xff] }
  0x28   :  { %521 = vmatprep.mubr.bf16.mxu1 %v2931_v29  ;;  %v161_v47 = vld [vmem:[%s4549_s0 + $0x370] sm:$0xff]  ;;  %v162_v49 = vld [vmem:[%s4549_s0 + $0x378] sm:$0xff]  ;;  %v144_v51 = vld [vmem:[%s4549_s0 + $0x2e8] sm:$0xff]  ;;  %v346_v55 = vpack.c.bf16 %v130_v46, %v129_v45 }
  0x29   :  { %2167 = vmatpush3.bf16.msra.mxu0 %v309_v13  ;;  %v175_v53 = vld [vmem:[%s4549_s0 + $0x3e0] sm:$0xff]  ;;  %v176_v54 = vld [vmem:[%s4549_s0 + $0x3e8] sm:$0xff]  ;;  %v362_v56 = vpack.c.bf16 %v162_v49, %v161_v47  ;;  %v353_v57 = vpack.c.bf16 %v144_v51, %v143_v50  ;;  %v141_v0 = vld [vmem:[%s4549_s0 + $0x2d0] sm:$0xff] }
  0x2a   :  { %2189 = vmatpush3.bf16.msra.mxu1 %v325_v15  ;;  %2168 = vmatprep.subr.bf16.mxu0 %v316_v16  ;;  %v127_v58 = vld [vmem:[%s4549_s0 + $0x260] sm:$0xff]  ;;  %v128_v59 = vld [vmem:[%s4549_s0 + $0x268] sm:$0xff]  ;;  %v369_v62 = vpack.c.bf16 %v176_v54, %v175_v53  ;;  %v142_v1 = vld [vmem:[%s4549_s0 + $0x2d8] sm:$0xff] }
  0x2b   :  { %2190 = vmatprep.subr.bf16.mxu1 %v332_v20  ;;  %v159_v60 = vld [vmem:[%s4549_s0 + $0x360] sm:$0xff]  ;;  %v160_v63 = vld [vmem:[%s4549_s0 + $0x368] sm:$0xff]  ;;  %v173_v2 = vld [vmem:[%s4549_s0 + $0x3d0] sm:$0xff]  ;;  %v345_v4 = vpack.c.bf16 %v128_v59, %v127_v58  ;;  %v352_v6 = vpack.c.bf16 %v142_v1, %v141_v0 }
  0x2c   :  { %v174_v3 = vld [vmem:[%s4549_s0 + $0x3d8] sm:$0xff]  ;;  %v361_v5 = vpack.c.bf16 %v160_v63, %v159_v60  ;;  %v125_v7 = vld [vmem:[%s4549_s0 + $0x250] sm:$0xff]  ;;  %v139_v13 = vld [vmem:[%s4549_s0 + $0x2c0] sm:$0xff] }
  0x2d   :  { %2169 = vmatpush3.bf16.msra.mxu0 %v308_v28  ;;  %v126_v8 = vld [vmem:[%s4549_s0 + $0x258] sm:$0xff]  ;;  %v157_v9 = vld [vmem:[%s4549_s0 + $0x350] sm:$0xff]  ;;  %v368_v11 = vpack.c.bf16 %v174_v3, %v173_v2  ;;  %v140_v14 = vld [vmem:[%s4549_s0 + $0x2c8] sm:$0xff] }
  0x2e   :  { %2191 = vmatpush3.bf16.msra.mxu1 %v324_v30  ;;  %2170 = vmatprep.subr.bf16.mxu0 %v315_v31  ;;  %v158_v12 = vld [vmem:[%s4549_s0 + $0x358] sm:$0xff]  ;;  %v171_v15 = vld [vmem:[%s4549_s0 + $0x3c0] sm:$0xff]  ;;  %v172_v16 = vld [vmem:[%s4549_s0 + $0x3c8] sm:$0xff]  ;;  %v344_v17 = vpack.c.bf16 %v126_v8, %v125_v7  ;;  %v351_v19 = vpack.c.bf16 %v140_v14, %v139_v13 }
  0x2f   :  { %2192 = vmatprep.subr.bf16.mxu1 %v331_v35  ;;  %v360_v18 = vpack.c.bf16 %v158_v12, %v157_v9  ;;  %v123_v20 = vld [vmem:[%s4549_s0 + $0x240] sm:$0xff]  ;;  %v124_v21 = vld [vmem:[%s4549_s0 + $0x248] sm:$0xff]  ;;  %v367_v23 = vpack.c.bf16 %v172_v16, %v171_v15  ;;  %v137_v25 = vld [vmem:[%s4549_s0 + $0x2b0] sm:$0xff] }
  0x30   :  { %v155_v22 = vld [vmem:[%s4549_s0 + $0x340] sm:$0xff]  ;;  %v156_v24 = vld [vmem:[%s4549_s0 + $0x348] sm:$0xff]  ;;  %v138_v26 = vld [vmem:[%s4549_s0 + $0x2b8] sm:$0xff]  ;;  %v343_v31 = vpack.c.bf16 %v124_v21, %v123_v20 }
  0x31   :  { %2171 = vmatpush3.bf16.msra.mxu0 %v307_v42  ;;  %v169_v28 = vld [vmem:[%s4549_s0 + $0x3b0] sm:$0xff]  ;;  %v170_v30 = vld [vmem:[%s4549_s0 + $0x3b8] sm:$0xff]  ;;  %v359_v32 = vpack.c.bf16 %v156_v24, %v155_v22  ;;  %v350_v33 = vpack.c.bf16 %v138_v26, %v137_v25  ;;  %v135_v39 = vld [vmem:[%s4549_s0 + $0x2a0] sm:$0xff] }
  0x32   :  { %2193 = vmatpush3.bf16.msra.mxu1 %v323_v43  ;;  %2200 = vmatprep.subr.bf16.mxu0 %v354_v44  ;;  %v121_v34 = vld [vmem:[%s4549_s0 + $0x230] sm:$0xff]  ;;  %v122_v35 = vld [vmem:[%s4549_s0 + $0x238] sm:$0xff]  ;;  %v366_v37 = vpack.c.bf16 %v170_v30, %v169_v28  ;;  %v136_v40 = vld [vmem:[%s4549_s0 + $0x2a8] sm:$0xff] }
  0x33   :  { %2222 = vmatprep.subr.bf16.mxu1 %v370_v48  ;;  %v153_v36 = vld [vmem:[%s4549_s0 + $0x330] sm:$0xff]  ;;  %v154_v38 = vld [vmem:[%s4549_s0 + $0x338] sm:$0xff]  ;;  %v167_v41 = vld [vmem:[%s4549_s0 + $0x3a0] sm:$0xff]  ;;  %v342_v43 = vpack.c.bf16 %v122_v35, %v121_v34  ;;  %v349_v45 = vpack.c.bf16 %v136_v40, %v135_v39 }
  0x34   :  { %482 = vmatmul.mubr.bf16.vlgmr.msra.gmra.mxu0 %v2979_v52  ;;  %v168_v42 = vld [vmem:[%s4549_s0 + $0x3a8] sm:$0xff]  ;;  %v358_v44 = vpack.c.bf16 %v154_v38, %v153_v36  ;;  %v119_v46 = vld [vmem:[%s4549_s0 + $0x220] sm:$0xff]  ;;  %v133_v51 = vld [vmem:[%s4549_s0 + $0x290] sm:$0xff] }
  0x35   :  { %522 = vmatmul.mubr.bf16.vlgmr.msra.gmra.mxu1 %v2979_v52  ;;  %2201 = vmatpush3.bf16.msra.mxu0 %v346_v55  ;;  %v120_v47 = vld [vmem:[%s4549_s0 + $0x228] sm:$0xff]  ;;  %v151_v48 = vld [vmem:[%s4549_s0 + $0x320] sm:$0xff]  ;;  %v365_v49 = vpack.c.bf16 %v168_v42, %v167_v41  ;;  %v134_v53 = vld [vmem:[%s4549_s0 + $0x298] sm:$0xff] }
  0x36   :  { %2223 = vmatpush3.bf16.msra.mxu1 %v362_v56  ;;  %2202 = vmatprep.subr.bf16.mxu0 %v353_v57  ;;  %v152_v50 = vld [vmem:[%s4549_s0 + $0x328] sm:$0xff]  ;;  %v165_v54 = vld [vmem:[%s4549_s0 + $0x390] sm:$0xff]  ;;  %v166_v55 = vld [vmem:[%s4549_s0 + $0x398] sm:$0xff]  ;;  %v341_v56 = vpack.c.bf16 %v120_v47, %v119_v46  ;;  %v348_v58 = vpack.c.bf16 %v134_v53, %v133_v51 }
  0x37   :  { %2224 = vmatprep.subr.bf16.mxu1 %v369_v62  ;;  %561 = vmatprep.mubr.bf16.mxu0 %v2931_v29  ;;  %v357_v57 = vpack.c.bf16 %v152_v50, %v151_v48  ;;  %v117_v59 = vld [vmem:[%s4549_s0 + $0x210] sm:$0xff]  ;;  %v118_v60 = vld [vmem:[%s4549_s0 + $0x218] sm:$0xff]  ;;  %v364_v63 = vpack.c.bf16 %v166_v55, %v165_v54  ;;  %v131_v1 = vld [vmem:[%s4549_s0 + $0x280] sm:$0xff] }
  0x38   :  { %601 = vmatprep.mubr.bf16.mxu1 %v2931_v29  ;;  %v149_v62 = vld [vmem:[%s4549_s0 + $0x310] sm:$0xff]  ;;  %v150_v0 = vld [vmem:[%s4549_s0 + $0x318] sm:$0xff]  ;;  %v132_v2 = vld [vmem:[%s4549_s0 + $0x288] sm:$0xff] }
  0x39   :  { %2203 = vmatpush3.bf16.msra.mxu0 %v345_v4  ;;  %v163_v3 = vld [vmem:[%s4549_s0 + $0x380] sm:$0xff]  ;;  %v164_v4 = vld [vmem:[%s4549_s0 + $0x388] sm:$0xff]  ;;  %v347_v7 = vpack.c.bf16 %v132_v2, %v131_v1  ;;  %v209_v14 = vld [vmem:[%s4549_s0 + $0x4f0] sm:$0xff] }
  0x3a   :  { %2225 = vmatpush3.bf16.msra.mxu1 %v361_v5  ;;  %2204 = vmatprep.subr.bf16.mxu0 %v352_v6  ;;  %v340_v5 = vpack.c.bf16 %v118_v60, %v117_v59  ;;  %v356_v6 = vpack.c.bf16 %v150_v0, %v149_v62  ;;  %v115_v8 = vld [vmem:[%s4549_s0 + $0x200] sm:$0xff]  ;;  %v116_v9 = vld [vmem:[%s4549_s0 + $0x208] sm:$0xff]  ;;  %v363_v12 = vpack.c.bf16 %v164_v4, %v163_v3  ;;  %v210_v15 = vld [vmem:[%s4549_s0 + $0x4f8] sm:$0xff] }
  0x3b   :  { %2226 = vmatprep.subr.bf16.mxu1 %v368_v11  ;;  %v147_v11 = vld [vmem:[%s4549_s0 + $0x300] sm:$0xff]  ;;  %v148_v13 = vld [vmem:[%s4549_s0 + $0x308] sm:$0xff]  ;;  %v241_v16 = vld [vmem:[%s4549_s0 + $0x5f0] sm:$0xff]  ;;  %v386_v20 = vpack.c.bf16 %v210_v15, %v209_v14 }
  0x3c   :  { %v193_v21 = vld [vmem:[%s4549_s0 + $0x470] sm:$0xff]  ;;  %v194_v22 = vld [vmem:[%s4549_s0 + $0x478] sm:$0xff]  ;;  %v207_v26 = vld [vmem:[%s4549_s0 + $0x4e0] sm:$0xff] }
  0x3d   :  { %2205 = vmatpush3.bf16.msra.mxu0 %v344_v17  ;;  %v242_v17 = vld [vmem:[%s4549_s0 + $0x5f8] sm:$0xff]  ;;  %v208_v28 = vld [vmem:[%s4549_s0 + $0x4e8] sm:$0xff]  ;;  %v239_v30 = vld [vmem:[%s4549_s0 + $0x5e0] sm:$0xff] }
  0x3e   :  { %2227 = vmatpush3.bf16.msra.mxu1 %v360_v18  ;;  %2206 = vmatprep.subr.bf16.mxu0 %v351_v19  ;;  %v339_v18 = vpack.c.bf16 %v116_v9, %v115_v8  ;;  %v355_v19 = vpack.c.bf16 %v148_v13, %v147_v11  ;;  %v402_v24 = vpack.c.bf16 %v242_v17, %v241_v16  ;;  %v226_v25 = vld [vmem:[%s4549_s0 + $0x578] sm:$0xff]  ;;  %v191_v35 = vld [vmem:[%s4549_s0 + $0x460] sm:$0xff]  ;;  %v192_v36 = vld [vmem:[%s4549_s0 + $0x468] sm:$0xff] }
  0x3f   :  { %2228 = vmatprep.subr.bf16.mxu1 %v367_v23  ;;  %v225_v23 = vld [vmem:[%s4549_s0 + $0x570] sm:$0xff]  ;;  %v385_v34 = vpack.c.bf16 %v208_v28, %v207_v26  ;;  %v224_v39 = vld [vmem:[%s4549_s0 + $0x568] sm:$0xff]  ;;  %v206_v41 = vld [vmem:[%s4549_s0 + $0x4d8] sm:$0xff] }
  0x40   :  { %v205_v40 = vld [vmem:[%s4549_s0 + $0x4d0] sm:$0xff]  ;;  %v190_v48 = vld [vmem:[%s4549_s0 + $0x458] sm:$0xff]  ;;  %v203_v53 = vld [vmem:[%s4549_s0 + $0x4c0] sm:$0xff] }
  0x41   :  { %2207 = vmatpush3.bf16.msra.mxu0 %v343_v31  ;;  %v240_v31 = vld [vmem:[%s4549_s0 + $0x5e8] sm:$0xff]  ;;  %v237_v42 = vld [vmem:[%s4549_s0 + $0x5d0] sm:$0xff]  ;;  %v384_v46 = vpack.c.bf16 %v206_v41, %v205_v40  ;;  %v222_v51 = vld [vmem:[%s4549_s0 + $0x558] sm:$0xff] }
  0x42   :  { %2229 = vmatpush3.bf16.msra.mxu1 %v359_v32  ;;  %2208 = vmatprep.subr.bf16.mxu0 %v350_v33  ;;  %v378_v32 = vpack.c.bf16 %v194_v22, %v193_v21  ;;  %v394_v33 = vpack.c.bf16 %v226_v25, %v225_v23  ;;  %v401_v38 = vpack.c.bf16 %v240_v31, %v239_v30  ;;  %v189_v47 = vld [vmem:[%s4549_s0 + $0x450] sm:$0xff]  ;;  %v204_v54 = vld [vmem:[%s4549_s0 + $0x4c8] sm:$0xff]  ;;  %v235_v55 = vld [vmem:[%s4549_s0 + $0x5c0] sm:$0xff] }
  0x43   :  { %2230 = vmatprep.subr.bf16.mxu1 %v366_v37  ;;  %v223_v37 = vld [vmem:[%s4549_s0 + $0x560] sm:$0xff]  ;;  %v383_v59 = vpack.c.bf16 %v204_v54, %v203_v53  ;;  %v188_v62 = vld [vmem:[%s4549_s0 + $0x448] sm:$0xff]  ;;  %v201_v2 = vld [vmem:[%s4549_s0 + $0x4b0] sm:$0xff] }
  0x44   :  { %v187_v60 = vld [vmem:[%s4549_s0 + $0x440] sm:$0xff]  ;;  %v220_v1 = vld [vmem:[%s4549_s0 + $0x548] sm:$0xff]  ;;  %v202_v3 = vld [vmem:[%s4549_s0 + $0x4b8] sm:$0xff] }
  0x45   :  { %2209 = vmatpush3.bf16.msra.mxu0 %v342_v43  ;;  %v238_v43 = vld [vmem:[%s4549_s0 + $0x5d8] sm:$0xff]  ;;  %v233_v4 = vld [vmem:[%s4549_s0 + $0x5b0] sm:$0xff]  ;;  %v382_v8 = vpack.c.bf16 %v202_v3, %v201_v2  ;;  %v199_v15 = vld [vmem:[%s4549_s0 + $0x4a0] sm:$0xff] }
  0x46   :  { %2231 = vmatpush3.bf16.msra.mxu1 %v358_v44  ;;  %2210 = vmatprep.subr.bf16.mxu0 %v349_v45  ;;  %v377_v44 = vpack.c.bf16 %v192_v36, %v191_v35  ;;  %v393_v45 = vpack.c.bf16 %v224_v39, %v223_v37  ;;  %v400_v50 = vpack.c.bf16 %v238_v43, %v237_v42  ;;  %v185_v9 = vld [vmem:[%s4549_s0 + $0x430] sm:$0xff]  ;;  %v186_v11 = vld [vmem:[%s4549_s0 + $0x438] sm:$0xff]  ;;  %v200_v16 = vld [vmem:[%s4549_s0 + $0x4a8] sm:$0xff] }
  0x47   :  { %2232 = vmatprep.subr.bf16.mxu1 %v365_v49  ;;  %v221_v49 = vld [vmem:[%s4549_s0 + $0x550] sm:$0xff]  ;;  %v218_v14 = vld [vmem:[%s4549_s0 + $0x538] sm:$0xff]  ;;  %v231_v17 = vld [vmem:[%s4549_s0 + $0x5a0] sm:$0xff]  ;;  %v381_v21 = vpack.c.bf16 %v200_v16, %v199_v15 }
  0x48   :  { %v183_v22 = vld [vmem:[%s4549_s0 + $0x420] sm:$0xff]  ;;  %v184_v23 = vld [vmem:[%s4549_s0 + $0x428] sm:$0xff]  ;;  %v197_v28 = vld [vmem:[%s4549_s0 + $0x490] sm:$0xff] }
  0x49   :  { %2211 = vmatpush3.bf16.msra.mxu0 %v341_v56  ;;  %v236_v56 = vld [vmem:[%s4549_s0 + $0x5c8] sm:$0xff]  ;;  %v198_v30 = vld [vmem:[%s4549_s0 + $0x498] sm:$0xff]  ;;  %v229_v31 = vld [vmem:[%s4549_s0 + $0x590] sm:$0xff] }
  0x4a   :  { %2233 = vmatpush3.bf16.msra.mxu1 %v357_v57  ;;  %2212 = vmatprep.subr.bf16.mxu0 %v348_v58  ;;  %v376_v57 = vpack.c.bf16 %v190_v48, %v189_v47  ;;  %v392_v58 = vpack.c.bf16 %v222_v51, %v221_v49  ;;  %v399_v0 = vpack.c.bf16 %v236_v56, %v235_v55  ;;  %v216_v26 = vld [vmem:[%s4549_s0 + $0x528] sm:$0xff]  ;;  %v181_v36 = vld [vmem:[%s4549_s0 + $0x410] sm:$0xff]  ;;  %v182_v37 = vld [vmem:[%s4549_s0 + $0x418] sm:$0xff] }
  0x4b   :  { %2234 = vmatprep.subr.bf16.mxu1 %v364_v63  ;;  %v219_v63 = vld [vmem:[%s4549_s0 + $0x540] sm:$0xff]  ;;  %v380_v35 = vpack.c.bf16 %v198_v30, %v197_v28  ;;  %v214_v40 = vld [vmem:[%s4549_s0 + $0x518] sm:$0xff]  ;;  %v196_v42 = vld [vmem:[%s4549_s0 + $0x488] sm:$0xff] }
  0x4c   :  { %v195_v41 = vld [vmem:[%s4549_s0 + $0x480] sm:$0xff]  ;;  %v180_v49 = vld [vmem:[%s4549_s0 + $0x408] sm:$0xff]  ;;  %v273_v54 = vld [vmem:[%s4549_s0 + $0x6f0] sm:$0xff] }
  0x4d   :  { %2213 = vmatpush3.bf16.msra.mxu0 %v340_v5  ;;  %v234_v5 = vld [vmem:[%s4549_s0 + $0x5b8] sm:$0xff]  ;;  %v227_v43 = vld [vmem:[%s4549_s0 + $0x580] sm:$0xff]  ;;  %v379_v47 = vpack.c.bf16 %v196_v42, %v195_v41  ;;  %v212_v53 = vld [vmem:[%s4549_s0 + $0x508] sm:$0xff] }
  0x4e   :  { %2235 = vmatpush3.bf16.msra.mxu1 %v356_v6  ;;  %2214 = vmatprep.subr.bf16.mxu0 %v347_v7  ;;  %v375_v6 = vpack.c.bf16 %v188_v62, %v187_v60  ;;  %v391_v7 = vpack.c.bf16 %v220_v1, %v219_v63  ;;  %v398_v13 = vpack.c.bf16 %v234_v5, %v233_v4  ;;  %v179_v48 = vld [vmem:[%s4549_s0 + $0x400] sm:$0xff]  ;;  %v274_v55 = vld [vmem:[%s4549_s0 + $0x6f8] sm:$0xff]  ;;  %v305_v56 = vld [vmem:[%s4549_s0 + $0x7f0] sm:$0xff] }
  0x4f   :  { %2236 = vmatprep.subr.bf16.mxu1 %v363_v12  ;;  %v217_v12 = vld [vmem:[%s4549_s0 + $0x530] sm:$0xff]  ;;  %v418_v60 = vpack.c.bf16 %v274_v55, %v273_v54  ;;  %v258_v63 = vld [vmem:[%s4549_s0 + $0x678] sm:$0xff]  ;;  %v271_v3 = vld [vmem:[%s4549_s0 + $0x6e0] sm:$0xff] }
  0x50   :  { %v257_v62 = vld [vmem:[%s4549_s0 + $0x670] sm:$0xff]  ;;  %v290_v2 = vld [vmem:[%s4549_s0 + $0x778] sm:$0xff]  ;;  %v272_v4 = vld [vmem:[%s4549_s0 + $0x6e8] sm:$0xff] }
  0x51   :  { %2215 = vmatpush3.bf16.msra.mxu0 %v339_v18  ;;  %v232_v18 = vld [vmem:[%s4549_s0 + $0x5a8] sm:$0xff]  ;;  %v303_v5 = vld [vmem:[%s4549_s0 + $0x7e0] sm:$0xff]  ;;  %v269_v16 = vld [vmem:[%s4549_s0 + $0x6d0] sm:$0xff] }
  0x52   :  { %2237 = vmatpush3.bf16.msra.mxu1 %v355_v19  ;;  %2244 = vmatprep.subr.bf16.mxu0 %v386_v20  ;;  %v374_v19 = vpack.c.bf16 %v186_v11, %v185_v9  ;;  %v390_v20 = vpack.c.bf16 %v218_v14, %v217_v12  ;;  %v397_v25 = vpack.c.bf16 %v232_v18, %v231_v17  ;;  %v255_v11 = vld [vmem:[%s4549_s0 + $0x660] sm:$0xff]  ;;  %v256_v12 = vld [vmem:[%s4549_s0 + $0x668] sm:$0xff]  ;;  %v270_v17 = vld [vmem:[%s4549_s0 + $0x6d8] sm:$0xff] }
  0x53   :  { %2266 = vmatprep.subr.bf16.mxu1 %v402_v24  ;;  %v215_v24 = vld [vmem:[%s4549_s0 + $0x520] sm:$0xff]  ;;  %v417_v9 = vpack.c.bf16 %v272_v4, %v271_v3  ;;  %v288_v15 = vld [vmem:[%s4549_s0 + $0x768] sm:$0xff]  ;;  %v301_v18 = vld [vmem:[%s4549_s0 + $0x7d0] sm:$0xff] }
  0x54   :  { %562 = vmatmul.mubr.bf16.vlgmr.msra.gmra.mxu0 %v2979_v52  ;;  %v286_v28 = vld [vmem:[%s4549_s0 + $0x758] sm:$0xff]  ;;  %v267_v30 = vld [vmem:[%s4549_s0 + $0x6c0] sm:$0xff]  ;;  %v265_v41 = vld [vmem:[%s4549_s0 + $0x6b0] sm:$0xff] }
  0x55   :  { %602 = vmatmul.mubr.bf16.vlgmr.msra.gmra.mxu1 %v2979_v52  ;;  %2245 = vmatpush3.bf16.msra.mxu0 %v378_v32  ;;  %v230_v32 = vld [vmem:[%s4549_s0 + $0x598] sm:$0xff]  ;;  %v263_v54 = vld [vmem:[%s4549_s0 + $0x6a0] sm:$0xff]  ;;  %v264_v55 = vld [vmem:[%s4549_s0 + $0x6a8] sm:$0xff] }
  0x56   :  { %2267 = vmatpush3.bf16.msra.mxu1 %v394_v33  ;;  %2246 = vmatprep.subr.bf16.mxu0 %v385_v34  ;;  %v373_v33 = vpack.c.bf16 %v184_v23, %v183_v22  ;;  %v389_v34 = vpack.c.bf16 %v216_v26, %v215_v24  ;;  %v396_v39 = vpack.c.bf16 %v230_v32, %v229_v31  ;;  %v253_v23 = vld [vmem:[%s4549_s0 + $0x650] sm:$0xff]  ;;  %v254_v24 = vld [vmem:[%s4549_s0 + $0x658] sm:$0xff]  ;;  %v268_v31 = vld [vmem:[%s4549_s0 + $0x6c8] sm:$0xff] }
  0x57   :  { %2268 = vmatprep.subr.bf16.mxu1 %v401_v38  ;;  %641 = vmatprep.mubr.bf16.mxu0 %v2931_v29  ;;  %v213_v38 = vld [vmem:[%s4549_s0 + $0x510] sm:$0xff]  ;;  %v416_v22 = vpack.c.bf16 %v270_v17, %v269_v16  ;;  %v299_v32 = vld [vmem:[%s4549_s0 + $0x7c0] sm:$0xff]  ;;  %v266_v42 = vld [vmem:[%s4549_s0 + $0x6b8] sm:$0xff] }
  0x58   :  { %681 = vmatprep.mubr.bf16.mxu1 %v2931_v29  ;;  %v261_v3 = vld [vmem:[%s4549_s0 + $0x690] sm:$0xff]  ;;  %v262_v4 = vld [vmem:[%s4549_s0 + $0x698] sm:$0xff]  ;;  %v259_v16 = vld [vmem:[%s4549_s0 + $0x680] sm:$0xff] }
  0x59   :  { %2247 = vmatpush3.bf16.msra.mxu0 %v377_v44  ;;  %v228_v44 = vld [vmem:[%s4549_s0 + $0x588] sm:$0xff] }
  0x5a   :  { %2269 = vmatpush3.bf16.msra.mxu1 %v393_v45  ;;  %2248 = vmatprep.subr.bf16.mxu0 %v384_v46  ;;  %v372_v45 = vpack.c.bf16 %v182_v37, %v181_v36  ;;  %v388_v46 = vpack.c.bf16 %v214_v40, %v213_v38  ;;  %v395_v51 = vpack.c.bf16 %v228_v44, %v227_v43  ;;  %v251_v37 = vld [vmem:[%s4549_s0 + $0x640] sm:$0xff]  ;;  %v252_v38 = vld [vmem:[%s4549_s0 + $0x648] sm:$0xff]  ;;  %v297_v43 = vld [vmem:[%s4549_s0 + $0x7b0] sm:$0xff] }
  0x5b   :  { %2270 = vmatprep.subr.bf16.mxu1 %v400_v50  ;;  %v211_v50 = vld [vmem:[%s4549_s0 + $0x500] sm:$0xff]  ;;  %v415_v36 = vpack.c.bf16 %v268_v31, %v267_v30  ;;  %v284_v40 = vld [vmem:[%s4549_s0 + $0x748] sm:$0xff]  ;;  %v298_v44 = vld [vmem:[%s4549_s0 + $0x7b8] sm:$0xff] }
  0x5c   :  { %v260_v17 = vld [vmem:[%s4549_s0 + $0x688] sm:$0xff] }
  0x5d   :  { %2249 = vmatpush3.bf16.msra.mxu0 %v376_v57  ;;  %v306_v57 = vld [vmem:[%s4549_s0 + $0x7f8] sm:$0xff] }
  0x5e   :  { %2271 = vmatpush3.bf16.msra.mxu1 %v392_v58  ;;  %2250 = vmatprep.subr.bf16.mxu0 %v383_v59  ;;  %v371_v58 = vpack.c.bf16 %v180_v49, %v179_v48  ;;  %v387_v59 = vpack.c.bf16 %v212_v53, %v211_v50  ;;  %v434_v1 = vpack.c.bf16 %v306_v57, %v305_v56  ;;  %v249_v48 = vld [vmem:[%s4549_s0 + $0x630] sm:$0xff]  ;;  %v250_v49 = vld [vmem:[%s4549_s0 + $0x638] sm:$0xff]  ;;  %v295_v56 = vld [vmem:[%s4549_s0 + $0x7a0] sm:$0xff] }
  0x5f   :  { %2272 = vmatprep.subr.bf16.mxu1 %v399_v0  ;;  %v289_v0 = vld [vmem:[%s4549_s0 + $0x770] sm:$0xff]  ;;  %v282_v53 = vld [vmem:[%s4549_s0 + $0x738] sm:$0xff]  ;;  %v296_v57 = vld [vmem:[%s4549_s0 + $0x7a8] sm:$0xff] }
  0x60   :  { %v281_v50 = vld [vmem:[%s4549_s0 + $0x730] sm:$0xff] }
  0x61   :  { %2251 = vmatpush3.bf16.msra.mxu0 %v375_v6  ;;  %v304_v6 = vld [vmem:[%s4549_s0 + $0x7e8] sm:$0xff] }
  0x62   :  { %2273 = vmatpush3.bf16.msra.mxu1 %v391_v7  ;;  %2252 = vmatprep.subr.bf16.mxu0 %v382_v8  ;;  %v410_v7 = vpack.c.bf16 %v258_v63, %v257_v62  ;;  %v426_v8 = vpack.c.bf16 %v290_v2, %v289_v0  ;;  %v433_v14 = vpack.c.bf16 %v304_v6, %v303_v5  ;;  %v247_v62 = vld [vmem:[%s4549_s0 + $0x620] sm:$0xff]  ;;  %v248_v63 = vld [vmem:[%s4549_s0 + $0x628] sm:$0xff]  ;;  %v293_v5 = vld [vmem:[%s4549_s0 + $0x790] sm:$0xff] }
  0x63   :  { %2274 = vmatprep.subr.bf16.mxu1 %v398_v13  ;;  %v287_v13 = vld [vmem:[%s4549_s0 + $0x760] sm:$0xff]  ;;  %v280_v2 = vld [vmem:[%s4549_s0 + $0x728] sm:$0xff]  ;;  %v294_v6 = vld [vmem:[%s4549_s0 + $0x798] sm:$0xff] }
  0x64   :  { %v279_v0 = vld [vmem:[%s4549_s0 + $0x720] sm:$0xff] }
  0x65   :  { %2253 = vmatpush3.bf16.msra.mxu0 %v374_v19  ;;  %v302_v19 = vld [vmem:[%s4549_s0 + $0x7d8] sm:$0xff] }
  0x66   :  { %2275 = vmatpush3.bf16.msra.mxu1 %v390_v20  ;;  %2254 = vmatprep.subr.bf16.mxu0 %v381_v21  ;;  %v409_v20 = vpack.c.bf16 %v256_v12, %v255_v11  ;;  %v425_v21 = vpack.c.bf16 %v288_v15, %v287_v13  ;;  %v432_v26 = vpack.c.bf16 %v302_v19, %v301_v18  ;;  %v245_v11 = vld [vmem:[%s4549_s0 + $0x610] sm:$0xff]  ;;  %v246_v12 = vld [vmem:[%s4549_s0 + $0x618] sm:$0xff]  ;;  %v291_v18 = vld [vmem:[%s4549_s0 + $0x780] sm:$0xff] }
  0x67   :  { %2276 = vmatprep.subr.bf16.mxu1 %v397_v25  ;;  %v285_v25 = vld [vmem:[%s4549_s0 + $0x750] sm:$0xff]  ;;  %v278_v15 = vld [vmem:[%s4549_s0 + $0x718] sm:$0xff]  ;;  %v292_v19 = vld [vmem:[%s4549_s0 + $0x788] sm:$0xff] }
  0x68   :  { %v277_v13 = vld [vmem:[%s4549_s0 + $0x710] sm:$0xff] }
  0x69   :  { %2255 = vmatpush3.bf16.msra.mxu0 %v373_v33  ;;  %v300_v33 = vld [vmem:[%s4549_s0 + $0x7c8] sm:$0xff] }
  0x6a   :  { %2277 = vmatpush3.bf16.msra.mxu1 %v389_v34  ;;  %2256 = vmatprep.subr.bf16.mxu0 %v380_v35  ;;  %v408_v34 = vpack.c.bf16 %v254_v24, %v253_v23  ;;  %v424_v35 = vpack.c.bf16 %v286_v28, %v285_v25  ;;  %v243_v23 = vld [vmem:[%s4549_s0 + $0x600] sm:$0xff]  ;;  %v244_v24 = vld [vmem:[%s4549_s0 + $0x608] sm:$0xff]  ;;  %v427_v25 = vpack.c.bf16 %v292_v19, %v291_v18 }
  0x6b   :  { %2278 = vmatprep.subr.bf16.mxu1 %v396_v39  ;;  %v283_v39 = vld [vmem:[%s4549_s0 + $0x740] sm:$0xff]  ;;  %v276_v28 = vld [vmem:[%s4549_s0 + $0x708] sm:$0xff]  ;;  %v403_v30 = vpack.c.bf16 %v244_v24, %v243_v23 }
  0x6d   :  { %2257 = vmatpush3.bf16.msra.mxu0 %v372_v45  ;;  %v407_v45 = vpack.c.bf16 %v252_v38, %v251_v37  ;;  %v797_v38 = vld [vmem:[%s4552_s3 + $0x10] sm:$0xff] }
  0x6e   :  { %2279 = vmatpush3.bf16.msra.mxu1 %v388_v46  ;;  %2258 = vmatprep.subr.bf16.mxu0 %v379_v47  ;;  %v423_v46 = vpack.c.bf16 %v284_v40, %v283_v39  ;;  %v414_v47 = vpack.c.bf16 %v266_v42, %v265_v41  ;;  %v798_v39 = vld [vmem:[%s4552_s3 + $0x18] sm:$0xff]  ;;  %v795_v40 = vld [vmem:[%s4552_s3] sm:$0xff]  ;;  %v796_v41 = vld [vmem:[%s4552_s3 + $0x8] sm:$0xff] }
  0x6f   :  { %2280 = vmatprep.subr.bf16.mxu1 %v395_v51  ;;  %v430_v51 = vpack.c.bf16 %v298_v44, %v297_v43  ;;  %v803_v42 = vpack.c.bf16 %v796_v41, %v795_v40  ;;  %v1012_v43 = vld [vmem:[%s4550_s1 + $0xf0] sm:$0xff]  ;;  %v1013_v44 = vld [vmem:[%s4550_s1 + $0xf8] sm:$0xff] }
  0x71   :  { %2259 = vmatpush3.bf16.msra.mxu0 %v371_v58  ;;  %v406_v58 = vpack.c.bf16 %v250_v49, %v249_v48  ;;  %v898_v48 = vld [vmem:[%s4553_s4 + $0x38] sm:$0xff] }
  0x72   :  { %2281 = vmatpush3.bf16.msra.mxu1 %v387_v59  ;;  %2288 = vmatprep.subr.bf16.mxu0 %v418_v60  ;;  %v422_v59 = vpack.c.bf16 %v282_v53, %v281_v50  ;;  %v413_v60 = vpack.c.bf16 %v264_v55, %v263_v54  ;;  %v3586_v53 = vstv %s769_s25 }
  0x73   :  { %2310 = vmatprep.subr.bf16.mxu1 %v434_v1  ;;  %v429_v1 = vpack.c.bf16 %v296_v57, %v295_v56 }
  0x74   :  { %642 = vmatmul.mubr.bf16.vlgmr.msra.gmra.mxu0 %v2979_v52 }
  0x75   :  { %682 = vmatmul.mubr.bf16.vlgmr.msra.gmra.mxu1 %v2979_v52  ;;  %2289 = vmatpush3.bf16.msra.mxu0 %v410_v7  ;;  %v405_v7 = vpack.c.bf16 %v248_v63, %v247_v62 }
  0x76   :  { %2311 = vmatpush3.bf16.msra.mxu1 %v426_v8  ;;  %2290 = vmatprep.subr.bf16.mxu0 %v417_v9  ;;  %v421_v8 = vpack.c.bf16 %v280_v2, %v279_v0  ;;  %v412_v9 = vpack.c.bf16 %v262_v4, %v261_v3 }
  0x77   :  { %2312 = vmatprep.subr.bf16.mxu1 %v433_v14  ;;  %721 = vmatprep.mubr.bf16.mxu0 %v2931_v29  ;;  %v428_v14 = vpack.c.bf16 %v294_v6, %v293_v5  ;;  %v893_v5 = vld [vmem:[%s4553_s4 + $0x10] sm:$0xff]  ;;  %v894_v6 = vld [vmem:[%s4553_s4 + $0x18] sm:$0xff] }
  0x78   :  { %761 = vmatprep.mubr.bf16.mxu1 %v2931_v29  ;;  %v431_v29 = vpack.c.bf16 %v300_v33, %v299_v32  ;;  %v801_v32 = vld [vmem:[%s4552_s3 + $0x30] sm:$0xff]  ;;  %v802_v33 = vld [vmem:[%s4552_s3 + $0x38] sm:$0xff] }
  0x79   :  { %2291 = vmatpush3.bf16.msra.mxu0 %v409_v20  ;;  %v404_v20 = vpack.c.bf16 %v246_v12, %v245_v11 }
  0x7a   :  { %2313 = vmatpush3.bf16.msra.mxu1 %v425_v21  ;;  %2292 = vmatprep.subr.bf16.mxu0 %v416_v22  ;;  %v420_v21 = vpack.c.bf16 %v278_v15, %v277_v13  ;;  %v411_v22 = vpack.c.bf16 %v260_v17, %v259_v16 }
  0x7b   :  { %2314 = vmatprep.subr.bf16.mxu1 %v432_v26  ;;  %v275_v26 = vld [vmem:[%s4549_s0 + $0x700] sm:$0xff] }
  0x7c   :  { %v419_v31 = vpack.c.bf16 %v276_v28, %v275_v26 }
  0x7d   :  { %2293 = vmatpush3.bf16.msra.mxu0 %v408_v34  ;;  %v806_v34 = vpack.c.bf16 %v802_v33, %v801_v32 }
  0x7e   :  { %2315 = vmatpush3.bf16.msra.mxu1 %v424_v35  ;;  %2294 = vmatprep.subr.bf16.mxu0 %v415_v36  ;;  %v2678_v35 = vmov 0.0   ;;  %v800_v36 = vld [vmem:[%s4552_s3 + $0x28] sm:$0xff] }
  0x7f   :  { %2316 = vmatprep.subr.bf16.mxu1 %v431_v29  ;;  %v804_v29 = vpack.c.bf16 %v798_v39, %v797_v38 }
  0x81   :  { %2295 = vmatpush3.bf16.msra.mxu0 %v407_v45  ;;  %v1253_v45 = vpack.c.bf16 %v1013_v44, %v1012_v43 }
  0x82   :  { %2317 = vmatpush3.bf16.msra.mxu1 %v423_v46  ;;  %2296 = vmatprep.subr.bf16.mxu0 %v414_v47  ;;  %v897_v47 = vld [vmem:[%s4553_s4 + $0x30] sm:$0xff] }
  0x83   :  { %2318 = vmatprep.subr.bf16.mxu1 %v430_v51  ;;  %v902_v50 = vpack.c.bf16 %v898_v48, %v897_v47 }
  0x85   :  { %2297 = vmatpush3.bf16.msra.mxu0 %v406_v58  ;;  %v895_v58 = vld [vmem:[%s4553_s4 + $0x20] sm:$0xff] }
  0x86   :  { %2319 = vmatpush3.bf16.msra.mxu1 %v422_v59  ;;  %2298 = vmatprep.subr.bf16.mxu0 %v413_v60  ;;  %v896_v59 = vld [vmem:[%s4553_s4 + $0x28] sm:$0xff] }
  0x87   :  { %2320 = vmatprep.subr.bf16.mxu1 %v429_v1  ;;  %v901_v63 = vpack.c.bf16 %v896_v59, %v895_v58 }
  0x89   :  { %2299 = vmatpush3.bf16.msra.mxu0 %v405_v7  ;;  %v900_v7 = vpack.c.bf16 %v894_v6, %v893_v5 }
  0x8a   :  { %2321 = vmatpush3.bf16.msra.mxu1 %v421_v8  ;;  %2300 = vmatprep.subr.bf16.mxu0 %v412_v9 }
  0x8b   :  { %2322 = vmatprep.subr.bf16.mxu1 %v428_v14 }
  0x8d   :  { %2301 = vmatpush3.bf16.msra.mxu0 %v404_v20 }
  0x8e   :  { %2323 = vmatpush3.bf16.msra.mxu1 %v420_v21  ;;  %2302 = vmatprep.subr.bf16.mxu0 %v411_v22 }
  0x8f   :  { %2324 = vmatprep.subr.bf16.mxu1 %v427_v25 }
  0x91   :  { %2303 = vmatpush3.bf16.msra.mxu0 %v403_v30 }
  0x92   :  { %2325 = vmatpush3.bf16.msra.mxu1 %v419_v31  ;;  %2536 = vmatprep.subr.bf16.mxu0 %v2678_v35 }
  0x93   :  { %2548 = vmatprep.subr.bf16.mxu1 %v2678_v35 }
  0x94   :  { %722 = vmatmul.mubr.bf16.vlgmr.msra.gmra.mxu0 %v2979_v52 }
  0x95   :  { %762 = vmatmul.mubr.bf16.vlgmr.msra.gmra.mxu1 %v2979_v52  ;;  %2537 = vmatpush3.bf16.msra.mxu0 %v806_v34  ;;  %v799_v52 = vld [vmem:[%s4552_s3 + $0x20] sm:$0xff] }
  0x96   :  { %2538 = vmatprep.subr.bf16.mxu0 %v2678_v35  ;;  %v805_v37 = vpack.c.bf16 %v800_v36, %v799_v52  ;;  %2544 = vmatprep.mubr.msk.bf16.mxu0 %vm2679_vm0, %v2678_v35 }
  0x97   :  { %2556 = vmatprep.mubr.msk.bf16.mxu1 %vm2679_vm0, %v2678_v35  ;;  %2549 = vmatpush3.bf16.msra.mxu1 %v902_v50 }
  0x98   :  { %2550 = vmatprep.subr.bf16.mxu1 %v2678_v35 }
  0x99   :  { %2539 = vmatpush3.bf16.msra.mxu0 %v805_v37 }
  0x9a   :  { %2540 = vmatprep.subr.bf16.mxu0 %v2678_v35 }
  0x9b   :  { %2551 = vmatpush3.bf16.msra.mxu1 %v901_v63 }
  0x9c   :  { %2552 = vmatprep.subr.bf16.mxu1 %v2678_v35 }
  0x9d   :  { %2541 = vmatpush3.bf16.msra.mxu0 %v804_v29 }
  0x9e   :  { %2542 = vmatprep.subr.bf16.mxu0 %v2678_v35 }
  0x9f   :  { %2553 = vmatpush3.bf16.msra.mxu1 %v900_v7 }
  0xa0   :  { %2554 = vmatprep.subr.bf16.mxu1 %v2678_v35 }
  0xa1   :  { %2543 = vmatpush3.bf16.msra.mxu0 %v803_v42 }
  0xa2   :  { %2342 = vmatprep.subr.bf16.mxu0 %v1253_v45 }
  0xf4   :  { %v2172_v46 = vpop.f32.mrf.mxu0 }
  0xf5   :  { %v2194_v49 = vpop.f32.mrf.mxu1 }
  0xf6   :  { %v2173_v51 = vpop.f32.mrf.mxu0 }
  0xf7   :  { %v2174_v54 = vadd.f32 %v2173_v51, %v2172_v46  ;;  %v2195_v55 = vpop.f32.mrf.mxu1 }
  0xf8   :  { %v2196_v56 = vadd.f32 %v2195_v55, %v2194_v49  ;;  %v2175_v57 = vpop.f32.mrf.mxu0 }
  0xf9   :  { %v771_v60 = vadd.f32 %v2174_v54, %v3586_v53  ;;  %v2197_v62 = vpop.f32.mrf.mxu1 }
  0xfa   :  { %v772_v0 = vadd.f32 %v2196_v56, %v3586_v53  ;;  %v2176_v1 = vpop.f32.mrf.mxu0 }
  0xfb   :  { %v779_v2 = vmax.f32 %v771_v60, 0.0  ;;  %v2198_v3 = vpop.f32.mrf.mxu1 }
  0xfc   :  { %v780_v4 = vmax.f32 %v772_v0, 0.0 }
  0xfd   :  { %v787_v8 = vpack.c.bf16 %v779_v2, %v779_v2 }
  0xfe   :  { %v788_v9 = vpack.c.bf16 %v780_v4, %v780_v4 }
  0xff   :  { %v815_v12 = vunpack.c.l.b16 %v787_v8 }
 0x100   :  { %v816_v11 = vunpack.c.l.b16 %v788_v9 }
 0x102   :  { %v823_v13 = vrot.slane %v816_v11, 7 }
 0x104   :  { %v825_v14 = vsel %vm824_vm1, %v823_v13, %v815_v12 }
 0x114   :  { %v2216_v15 = vpop.f32.mrf.mxu0 }
 0x115   :  { %v2238_v16 = vpop.f32.mrf.mxu1 }
 0x116   :  { %v2217_v17 = vpop.f32.mrf.mxu0 }
 0x117   :  { %v2239_v18 = vpop.f32.mrf.mxu1  ;;  %v2218_v33 = vadd.f32 %v2217_v17, %v2216_v15 }
 0x118   :  { %v2219_v19 = vpop.f32.mrf.mxu0  ;;  %v2240_v34 = vadd.f32 %v2239_v18, %v2238_v16  ;;  %v997_v18 = vld [vmem:[%s4550_s1 + $0x78] sm:$0xff] }
 0x119   :  { %v2241_v20 = vpop.f32.mrf.mxu1  ;;  %v773_v52 = vadd.f32 %v2218_v33, %v3586_v53  ;;  %v1009_v33 = vld [vmem:[%s4550_s1 + $0xd8] sm:$0xff] }
 0x11a   :  { %v2220_v21 = vpop.f32.mrf.mxu0  ;;  %v774_v37 = vadd.f32 %v2240_v34, %v3586_v53 }
 0x11b   :  { %v2242_v22 = vpop.f32.mrf.mxu1  ;;  %v781_v39 = vmax.f32 %v773_v52, 0.0  ;;  %v1010_v21 = vld [vmem:[%s4550_s1 + $0xe0] sm:$0xff] }
 0x11c   :  { %v782_v40 = vmax.f32 %v774_v37, 0.0  ;;  %v1011_v22 = vld [vmem:[%s4550_s1 + $0xe8] sm:$0xff]  ;;  %v993_v37 = vld [vmem:[%s4550_s1 + $0x58] sm:$0xff] }
 0x11d   :  { %v789_v42 = vpack.c.bf16 %v781_v39, %v781_v39  ;;  %v1007_v39 = vld [vmem:[%s4550_s1 + $0xc8] sm:$0xff] }
 0x11e   :  { %v790_v44 = vpack.c.bf16 %v782_v40, %v782_v40 }
 0x11f   :  { %v817_v46 = vunpack.c.l.b16 %v789_v42  ;;  %v991_v42 = vld [vmem:[%s4550_s1 + $0x48] sm:$0xff] }
 0x120   :  { %v818_v50 = vunpack.c.l.b16 %v790_v44  ;;  %v1005_v44 = vld [vmem:[%s4550_s1 + $0xb8] sm:$0xff] }
 0x121   :  { %v826_v55 = vrot.slane %v817_v46, 6 }
 0x122   :  { %v829_v0 = vrot.slane %v818_v50, 5  ;;  %v1003_v50 = vld [vmem:[%s4550_s1 + $0xa8] sm:$0xff] }
 0x123   :  { %v828_v4 = vsel %vm827_vm2, %v826_v55, %v825_v14  ;;  %v996_v14 = vld [vmem:[%s4550_s1 + $0x70] sm:$0xff]  ;;  %v986_v55 = vld [vmem:[%s4550_s1 + $0x20] sm:$0xff] }
 0x124   :  { %v831_v11 = vsel %vm830_vm3, %v829_v0, %v828_v4 }
 0x134   :  { %v2260_v23 = vpop.f32.mrf.mxu0 }
 0x135   :  { %v2282_v24 = vpop.f32.mrf.mxu1 }
 0x136   :  { %v2261_v25 = vpop.f32.mrf.mxu0 }
 0x137   :  { %v2283_v26 = vpop.f32.mrf.mxu1  ;;  %v2262_v36 = vadd.f32 %v2261_v25, %v2260_v23  ;;  %v1245_v25 = vpack.c.bf16 %v997_v18, %v996_v14  ;;  %v1077_v18 = vld [vmem:[%s4550_s1 + $0x2f8] sm:$0xff] }
 0x138   :  { %v2263_v28 = vpop.f32.mrf.mxu0  ;;  %v2284_v38 = vadd.f32 %v2283_v26, %v2282_v24 }
 0x139   :  { %v2285_v30 = vpop.f32.mrf.mxu1  ;;  %v775_v29 = vadd.f32 %v2262_v36, %v3586_v53  ;;  %v1252_v28 = vpack.c.bf16 %v1011_v22, %v1010_v21  ;;  %v992_v36 = vld [vmem:[%s4550_s1 + $0x50] sm:$0xff]  ;;  %v1075_v22 = vld [vmem:[%s4550_s1 + $0x2e8] sm:$0xff] }
 0x13a   :  { %v2264_v31 = vpop.f32.mrf.mxu0  ;;  %v776_v41 = vadd.f32 %v2284_v38, %v3586_v53  ;;  %v994_v30 = vld [vmem:[%s4550_s1 + $0x60] sm:$0xff] }
 0x13b   :  { %v2286_v32 = vpop.f32.mrf.mxu1  ;;  %v783_v43 = vmax.f32 %v775_v29, 0.0  ;;  %v995_v31 = vld [vmem:[%s4550_s1 + $0x68] sm:$0xff]  ;;  %v1006_v38 = vld [vmem:[%s4550_s1 + $0xc0] sm:$0xff]  ;;  %v1243_v29 = vpack.c.bf16 %v993_v37, %v992_v36 }
 0x13c   :  { %v784_v45 = vmax.f32 %v776_v41, 0.0  ;;  %v1008_v32 = vld [vmem:[%s4550_s1 + $0xd0] sm:$0xff]  ;;  %v1244_v34 = vpack.c.bf16 %v995_v31, %v994_v30  ;;  %v1250_v40 = vpack.c.bf16 %v1007_v39, %v1006_v38  ;;  %v990_v41 = vld [vmem:[%s4550_s1 + $0x40] sm:$0xff]  ;;  %v1073_v30 = vld [vmem:[%s4550_s1 + $0x2d8] sm:$0xff] }
 0x13d   :  { %v791_v47 = vpack.c.bf16 %v783_v43, %v783_v43  ;;  %v1251_v52 = vpack.c.bf16 %v1009_v33, %v1008_v32  ;;  %v1004_v43 = vld [vmem:[%s4550_s1 + $0xb0] sm:$0xff]  ;;  %v1057_v32 = vld [vmem:[%s4550_s1 + $0x258] sm:$0xff]  ;;  %v1071_v36 = vld [vmem:[%s4550_s1 + $0x2c8] sm:$0xff] }
 0x13e   :  { %v792_v51 = vpack.c.bf16 %v784_v45, %v784_v45  ;;  %v1242_v45 = vpack.c.bf16 %v991_v42, %v990_v41  ;;  %v1249_v46 = vpack.c.bf16 %v1005_v44, %v1004_v43  ;;  %v1056_v31 = vld [vmem:[%s4550_s1 + $0x250] sm:$0xff]  ;;  %v1054_v37 = vld [vmem:[%s4550_s1 + $0x240] sm:$0xff]  ;;  %v1055_v38 = vld [vmem:[%s4550_s1 + $0x248] sm:$0xff] }
 0x13f   :  { %v819_v56 = vunpack.c.l.b16 %v791_v47  ;;  %v988_v47 = vld [vmem:[%s4550_s1 + $0x30] sm:$0xff]  ;;  %v1069_v41 = vld [vmem:[%s4550_s1 + $0x2b8] sm:$0xff] }
 0x140   :  { %v820_v1 = vunpack.c.l.b16 %v792_v51  ;;  %v1052_v42 = vld [vmem:[%s4550_s1 + $0x230] sm:$0xff]  ;;  %v1053_v43 = vld [vmem:[%s4550_s1 + $0x238] sm:$0xff] }
 0x141   :  { %v832_v5 = vrot.slane %v819_v56, 4  ;;  %v987_v56 = vld [vmem:[%s4550_s1 + $0x28] sm:$0xff] }
 0x142   :  { %v835_v12 = vrot.slane %v820_v1, 3  ;;  %v891_v1 = vld [vmem:[%s4553_s4] sm:$0xff] }
 0x143   :  { %v834_v15 = vsel %vm833_vm4, %v832_v5, %v831_v11  ;;  %v999_v5 = vld [vmem:[%s4550_s1 + $0x88] sm:$0xff]  ;;  %v2128_v11 = vld [vmem:[%s4551_s2 + $0x2] sm:$0x3] }
 0x144   :  { %v837_v19 = vsel %vm836_vm5, %v835_v12, %v834_v15  ;;  %v1044_v12 = vld [vmem:[%s4550_s1 + $0x1f0] sm:$0xff]  ;;  %v1376_v15 = vrot.slane %v2128_v11, %v443_v10 }
 0x145   :  { %v1060_v10 = vld [vmem:[%s4550_s1 + $0x270] sm:$0xff] }
 0x146   :  { %v3731_v14 = vpack.c.bf16 %v1376_v15, %v1376_v15 }
 0x154   :  { %v2304_v48 = vpop.f32.mrf.mxu0 }
 0x155   :  { %v2326_v49 = vpop.f32.mrf.mxu1 }
 0x156   :  { %v2305_v54 = vpop.f32.mrf.mxu0 }
 0x157   :  { %v2306_v57 = vadd.f32 %v2305_v54, %v2304_v48  ;;  %v2327_v58 = vpop.f32.mrf.mxu1  ;;  %v989_v48 = vld [vmem:[%s4550_s1 + $0x38] sm:$0xff] }
 0x158   :  { %v2328_v59 = vadd.f32 %v2327_v58, %v2326_v49  ;;  %v2307_v60 = vpop.f32.mrf.mxu0  ;;  %v1002_v49 = vld [vmem:[%s4550_s1 + $0xa0] sm:$0xff]  ;;  %v1241_v51 = vpack.c.bf16 %v989_v48, %v988_v47  ;;  %v1001_v58 = vld [vmem:[%s4550_s1 + $0x98] sm:$0xff]  ;;  %v1067_v47 = vld [vmem:[%s4550_s1 + $0x2a8] sm:$0xff] }
 0x159   :  { %v777_v62 = vadd.f32 %v2306_v57, %v3586_v53  ;;  %v2329_v63 = vpop.f32.mrf.mxu1  ;;  %v1248_v54 = vpack.c.bf16 %v1003_v50, %v1002_v49  ;;  %v1000_v57 = vld [vmem:[%s4550_s1 + $0x90] sm:$0xff]  ;;  %v1050_v48 = vld [vmem:[%s4550_s1 + $0x220] sm:$0xff]  ;;  %v1051_v49 = vld [vmem:[%s4550_s1 + $0x228] sm:$0xff] }
 0x15a   :  { %v778_v2 = vadd.f32 %v2328_v59, %v3586_v53  ;;  %v2308_v3 = vpop.f32.mrf.mxu0  ;;  %v1240_v59 = vpack.c.bf16 %v987_v56, %v986_v55  ;;  %v1247_v60 = vpack.c.bf16 %v1001_v58, %v1000_v57  ;;  %v985_v63 = vld [vmem:[%s4550_s1 + $0x18] sm:$0xff]  ;;  %v1048_v56 = vld [vmem:[%s4550_s1 + $0x210] sm:$0xff] }
 0x15b   :  { %v785_v6 = vmax.f32 %v777_v62, 0.0  ;;  %v2330_v7 = vpop.f32.mrf.mxu1  ;;  %v984_v62 = vld [vmem:[%s4550_s1 + $0x10] sm:$0xff]  ;;  %v998_v3 = vld [vmem:[%s4550_s1 + $0x80] sm:$0xff]  ;;  %v1065_v55 = vld [vmem:[%s4550_s1 + $0x298] sm:$0xff] }
 0x15c   :  { %v786_v8 = vmax.f32 %v778_v2, 0.0  ;;  %v1239_v0 = vpack.c.bf16 %v985_v63, %v984_v62  ;;  %v892_v2 = vld [vmem:[%s4553_s4 + $0x8] sm:$0xff]  ;;  %v1049_v57 = vld [vmem:[%s4550_s1 + $0x218] sm:$0xff]  ;;  %v1046_v63 = vld [vmem:[%s4550_s1 + $0x200] sm:$0xff] }
 0x15d   :  { %v793_v9 = vpack.c.bf16 %v785_v6, %v785_v6  ;;  %v899_v4 = vpack.c.bf16 %v892_v2, %v891_v1  ;;  %v982_v6 = vld [vmem:[%s4550_s1] sm:$0xff]  ;;  %v983_v7 = vld [vmem:[%s4550_s1 + $0x8] sm:$0xff] }
 0x15e   :  { %v794_v13 = vpack.c.bf16 %v786_v8, %v786_v8  ;;  %v1246_v8 = vpack.c.bf16 %v999_v5, %v998_v3  ;;  %v1063_v62 = vld [vmem:[%s4550_s1 + $0x288] sm:$0xff]  ;;  %v1140_v3 = vld [vmem:[%s4550_s1 + $0x4f0] sm:$0xff] }
 0x15f   :  { %v821_v16 = vunpack.c.l.b16 %v793_v9  ;;  %v1238_v9 = vpack.c.bf16 %v983_v7, %v982_v6  ;;  %2555 = vmatpush3.bf16.msra.mxu1 %v899_v4  ;;  %v1141_v4 = vld [vmem:[%s4550_s1 + $0x4f8] sm:$0xff]  ;;  %v1124_v5 = vld [vmem:[%s4550_s1 + $0x470] sm:$0xff] }
 0x160   :  { %v822_v53 = vunpack.c.l.b16 %v794_v13  ;;  %v1045_v13 = vld [vmem:[%s4550_s1 + $0x1f8] sm:$0xff]  ;;  %v1317_v7 = vpack.c.bf16 %v1141_v4, %v1140_v3  ;;  %v1184_v4 = vld [vmem:[%s4550_s1 + $0x650] sm:$0xff] }
 0x161   :  { %v838_v17 = vrot.slane %v821_v16, 2  ;;  %v1269_v16 = vpack.c.bf16 %v1045_v13, %v1044_v12  ;;  %v1125_v6 = vld [vmem:[%s4550_s1 + $0x478] sm:$0xff]  ;;  %v1122_v12 = vld [vmem:[%s4550_s1 + $0x460] sm:$0xff]  ;;  %v1123_v13 = vld [vmem:[%s4550_s1 + $0x468] sm:$0xff] }
 0x162   :  { %v841_v20 = vrot.slane %v822_v53, 1  ;;  %v1076_v53 = vld [vmem:[%s4550_s1 + $0x2f0] sm:$0xff]  ;;  %v1201_v3 = vld [vmem:[%s4550_s1 + $0x6d8] sm:$0xff] }
 0x163   :  { %v840_v23 = vsel %vm839_vm6, %v838_v17, %v837_v19  ;;  %v1372_v17 = vrot.slane %v2128_v11, %v439_v27  ;;  %v1061_v19 = vld [vmem:[%s4550_s1 + $0x278] sm:$0xff]  ;;  %2364 = vmatprep.subr.bf16.mxu1 %v1269_v16  ;;  %v1074_v27 = vld [vmem:[%s4550_s1 + $0x2e0] sm:$0xff]  ;;  %v1139_v11 = vld [vmem:[%s4550_s1 + $0x4e8] sm:$0xff]  ;;  %v1308_v16 = vpack.c.bf16 %v1123_v13, %v1122_v12 }
 0x164   :  { %v843_v24 = vsel %vm842_vm7, %v841_v20, %v840_v23  ;;  %v1285_v20 = vpack.c.bf16 %v1077_v18, %v1076_v53  ;;  %v1277_v61 = vpack.c.bf16 %v1061_v19, %v1060_v10  ;;  %v1058_v23 = vld [vmem:[%s4550_s1 + $0x260] sm:$0xff]  ;;  %v1136_v53 = vld [vmem:[%s4550_s1 + $0x4d0] sm:$0xff]  ;;  %v1121_v10 = vld [vmem:[%s4550_s1 + $0x458] sm:$0xff] }
 0x165   :  { %v844_v26 = vpack.c.b16 %v843_v24, %v843_v24  ;;  %v3742_v21 = vpack.c.bf16 %v1372_v17, %v1372_v17  ;;  %v1059_v24 = vld [vmem:[%s4550_s1 + $0x268] sm:$0xff]  ;;  %v1137_v17 = vld [vmem:[%s4550_s1 + $0x4d8] sm:$0xff]  ;;  %v1120_v18 = vld [vmem:[%s4550_s1 + $0x450] sm:$0xff] }
 0x166   :  { %v1315_v19 = vpack.c.bf16 %v1137_v17, %v1136_v53  ;;  %v1183_v12 = vld [vmem:[%s4550_s1 + $0x648] sm:$0xff]  ;;  %v1197_v53 = vld [vmem:[%s4550_s1 + $0x6b8] sm:$0xff]  ;;  %v1180_v17 = vld [vmem:[%s4550_s1 + $0x630] sm:$0xff] }
 0x167   :  { %2545 = vmatmul.mubr.msk.bf16.vlgmr.msra.gmra.mxu0 %vm845_vm8, %v844_v26  ;;  %v1276_v26 = vpack.c.bf16 %v1059_v24, %v1058_v23  ;;  %v1119_v23 = vld [vmem:[%s4550_s1 + $0x448] sm:$0xff] }
 0x168   :  { %2343 = vmatpush3.bf16.msra.mxu0 %v1245_v25  ;;  %1413 = vmatprep.mubr.bf16.mxu0 %v3731_v14  ;;  %v1284_v25 = vpack.c.bf16 %v1075_v22, %v1074_v27  ;;  %v1135_v27 = vld [vmem:[%s4550_s1 + $0x4c8] sm:$0xff]  ;;  %v1118_v22 = vld [vmem:[%s4550_s1 + $0x440] sm:$0xff] }
 0x169   :  { %2344 = vmatprep.subr.bf16.mxu0 %v1252_v28  ;;  %v1072_v28 = vld [vmem:[%s4550_s1 + $0x2d0] sm:$0xff] }
 0x16a   :  { %v1283_v33 = vpack.c.bf16 %v1073_v30, %v1072_v28  ;;  %v1133_v28 = vld [vmem:[%s4550_s1 + $0x4b8] sm:$0xff]  ;;  %v1116_v30 = vld [vmem:[%s4550_s1 + $0x430] sm:$0xff] }
 0x16c   :  { %2345 = vmatpush3.bf16.msra.mxu0 %v1244_v34  ;;  %v1275_v34 = vpack.c.bf16 %v1057_v32, %v1056_v31  ;;  %v1117_v31 = vld [vmem:[%s4550_s1 + $0x438] sm:$0xff] }
 0x16d   :  { %2346 = vmatprep.subr.bf16.mxu0 %v1251_v52  ;;  %v1070_v52 = vld [vmem:[%s4550_s1 + $0x2c0] sm:$0xff] }
 0x16e   :  { %v1282_v39 = vpack.c.bf16 %v1071_v36, %v1070_v52  ;;  %v1131_v52 = vld [vmem:[%s4550_s1 + $0x4a8] sm:$0xff]  ;;  %v1114_v36 = vld [vmem:[%s4550_s1 + $0x420] sm:$0xff] }
 0x170   :  { %2347 = vmatpush3.bf16.msra.mxu0 %v1243_v29  ;;  %v1274_v29 = vpack.c.bf16 %v1055_v38, %v1054_v37  ;;  %v1115_v37 = vld [vmem:[%s4550_s1 + $0x428] sm:$0xff] }
 0x171   :  { %2348 = vmatprep.subr.bf16.mxu0 %v1250_v40  ;;  %v1068_v40 = vld [vmem:[%s4550_s1 + $0x2b0] sm:$0xff] }
 0x172   :  { %v1281_v44 = vpack.c.bf16 %v1069_v41, %v1068_v40  ;;  %v1129_v40 = vld [vmem:[%s4550_s1 + $0x498] sm:$0xff]  ;;  %v1112_v41 = vld [vmem:[%s4550_s1 + $0x410] sm:$0xff] }
 0x174   :  { %2349 = vmatpush3.bf16.msra.mxu0 %v1242_v45  ;;  %v1273_v45 = vpack.c.bf16 %v1053_v43, %v1052_v42  ;;  %v1113_v42 = vld [vmem:[%s4550_s1 + $0x418] sm:$0xff] }
 0x175   :  { %2350 = vmatprep.subr.bf16.mxu0 %v1249_v46  ;;  %v1066_v46 = vld [vmem:[%s4550_s1 + $0x2a0] sm:$0xff] }
 0x176   :  { %v1280_v50 = vpack.c.bf16 %v1067_v47, %v1066_v46  ;;  %v1127_v46 = vld [vmem:[%s4550_s1 + $0x488] sm:$0xff]  ;;  %v1110_v47 = vld [vmem:[%s4550_s1 + $0x400] sm:$0xff] }
 0x178   :  { %2351 = vmatpush3.bf16.msra.mxu0 %v1241_v51  ;;  %v1272_v51 = vpack.c.bf16 %v1051_v49, %v1050_v48  ;;  %v1111_v48 = vld [vmem:[%s4550_s1 + $0x408] sm:$0xff] }
 0x179   :  { %2352 = vmatprep.subr.bf16.mxu0 %v1248_v54  ;;  %v1064_v54 = vld [vmem:[%s4550_s1 + $0x290] sm:$0xff] }
 0x17a   :  { %v1279_v58 = vpack.c.bf16 %v1065_v55, %v1064_v54  ;;  %v1205_v54 = vld [vmem:[%s4550_s1 + $0x6f8] sm:$0xff]  ;;  %v1188_v55 = vld [vmem:[%s4550_s1 + $0x670] sm:$0xff] }
 0x17c   :  { %2353 = vmatpush3.bf16.msra.mxu0 %v1240_v59  ;;  %v1271_v59 = vpack.c.bf16 %v1049_v57, %v1048_v56  ;;  %v1189_v56 = vld [vmem:[%s4550_s1 + $0x678] sm:$0xff] }
 0x17d   :  { %2354 = vmatprep.subr.bf16.mxu0 %v1247_v60  ;;  %v1062_v60 = vld [vmem:[%s4550_s1 + $0x280] sm:$0xff] }
 0x17e   :  { %v1278_v1 = vpack.c.bf16 %v1063_v62, %v1062_v60  ;;  %v1203_v60 = vld [vmem:[%s4550_s1 + $0x6e8] sm:$0xff]  ;;  %v1186_v62 = vld [vmem:[%s4550_s1 + $0x660] sm:$0xff] }
 0x180   :  { %2355 = vmatpush3.bf16.msra.mxu0 %v1239_v0  ;;  %v1047_v0 = vld [vmem:[%s4550_s1 + $0x208] sm:$0xff] }
 0x181   :  { %2356 = vmatprep.subr.bf16.mxu0 %v1246_v8  ;;  %v1270_v2 = vpack.c.bf16 %v1047_v0, %v1046_v63  ;;  %v1309_v8 = vpack.c.bf16 %v1125_v6, %v1124_v5  ;;  %v1187_v63 = vld [vmem:[%s4550_s1 + $0x668] sm:$0xff]  ;;  %v1185_v5 = vld [vmem:[%s4550_s1 + $0x658] sm:$0xff] }
 0x184   :  { %2357 = vmatpush3.bf16.msra.mxu0 %v1238_v9  ;;  %v1138_v9 = vld [vmem:[%s4550_s1 + $0x4e0] sm:$0xff] }
 0x185   :  { %2386 = vmatprep.subr.bf16.mxu0 %v1285_v20  ;;  %v1316_v15 = vpack.c.bf16 %v1139_v11, %v1138_v9  ;;  %v1307_v20 = vpack.c.bf16 %v1121_v10, %v1120_v18  ;;  %v1199_v9 = vld [vmem:[%s4550_s1 + $0x6c8] sm:$0xff]  ;;  %v1182_v11 = vld [vmem:[%s4550_s1 + $0x640] sm:$0xff]  ;;  %v1181_v18 = vld [vmem:[%s4550_s1 + $0x638] sm:$0xff] }
 0x187   :  { %1414 = vmatmul.mubr.bf16.vlgmr.msra.gmra.mxu0 %v3742_v21 }
 0x188   :  { %2387 = vmatpush3.bf16.msra.mxu0 %v1277_v61  ;;  %1493 = vmatprep.mubr.bf16.mxu0 %v3731_v14  ;;  %v1134_v61 = vld [vmem:[%s4550_s1 + $0x4c0] sm:$0xff] }
 0x189   :  { %2388 = vmatprep.subr.bf16.mxu0 %v1284_v25  ;;  %v1314_v24 = vpack.c.bf16 %v1135_v27, %v1134_v61  ;;  %v1306_v25 = vpack.c.bf16 %v1119_v23, %v1118_v22  ;;  %v1195_v61 = vld [vmem:[%s4550_s1 + $0x6a8] sm:$0xff]  ;;  %v1178_v27 = vld [vmem:[%s4550_s1 + $0x620] sm:$0xff] }
 0x18a   :  { %v1179_v22 = vld [vmem:[%s4550_s1 + $0x628] sm:$0xff] }
 0x18c   :  { %2389 = vmatpush3.bf16.msra.mxu0 %v1276_v26  ;;  %v1132_v26 = vld [vmem:[%s4550_s1 + $0x4b0] sm:$0xff] }
 0x18d   :  { %2390 = vmatprep.subr.bf16.mxu0 %v1283_v33  ;;  %v1313_v32 = vpack.c.bf16 %v1133_v28, %v1132_v26  ;;  %v1305_v33 = vpack.c.bf16 %v1117_v31, %v1116_v30  ;;  %v1193_v26 = vld [vmem:[%s4550_s1 + $0x698] sm:$0xff]  ;;  %v1176_v28 = vld [vmem:[%s4550_s1 + $0x610] sm:$0xff] }
 0x18e   :  { %v1177_v30 = vld [vmem:[%s4550_s1 + $0x618] sm:$0xff] }
 0x190   :  { %2391 = vmatpush3.bf16.msra.mxu0 %v1275_v34  ;;  %v1130_v34 = vld [vmem:[%s4550_s1 + $0x4a0] sm:$0xff] }
 0x191   :  { %2392 = vmatprep.subr.bf16.mxu0 %v1282_v39  ;;  %v1312_v38 = vpack.c.bf16 %v1131_v52, %v1130_v34  ;;  %v1304_v39 = vpack.c.bf16 %v1115_v37, %v1114_v36  ;;  %v1191_v34 = vld [vmem:[%s4550_s1 + $0x688] sm:$0xff]  ;;  %v1174_v52 = vld [vmem:[%s4550_s1 + $0x600] sm:$0xff] }
 0x192   :  { %v1175_v36 = vld [vmem:[%s4550_s1 + $0x608] sm:$0xff] }
 0x194   :  { %2393 = vmatpush3.bf16.msra.mxu0 %v1274_v29  ;;  %v1128_v29 = vld [vmem:[%s4550_s1 + $0x490] sm:$0xff] }
 0x195   :  { %2394 = vmatprep.subr.bf16.mxu0 %v1281_v44  ;;  %v1311_v43 = vpack.c.bf16 %v1129_v40, %v1128_v29  ;;  %v1303_v44 = vpack.c.bf16 %v1113_v42, %v1112_v41  ;;  %v1029_v29 = vld [vmem:[%s4550_s1 + $0x178] sm:$0xff]  ;;  %v1042_v41 = vld [vmem:[%s4550_s1 + $0x1e0] sm:$0xff]  ;;  %v1043_v42 = vld [vmem:[%s4550_s1 + $0x1e8] sm:$0xff] }
 0x198   :  { %2395 = vmatpush3.bf16.msra.mxu0 %v1273_v45  ;;  %v1126_v45 = vld [vmem:[%s4550_s1 + $0x480] sm:$0xff] }
 0x199   :  { %2396 = vmatprep.subr.bf16.mxu0 %v1280_v50  ;;  %v1310_v49 = vpack.c.bf16 %v1127_v46, %v1126_v45  ;;  %v1302_v50 = vpack.c.bf16 %v1111_v48, %v1110_v47  ;;  %v1268_v47 = vpack.c.bf16 %v1043_v42, %v1042_v41  ;;  %v1026_v48 = vld [vmem:[%s4550_s1 + $0x160] sm:$0xff] }
 0x19c   :  { %2397 = vmatpush3.bf16.msra.mxu0 %v1272_v51  ;;  %v1204_v51 = vld [vmem:[%s4550_s1 + $0x6f0] sm:$0xff] }
 0x19d   :  { %2398 = vmatprep.subr.bf16.mxu0 %v1279_v58  ;;  %v1349_v57 = vpack.c.bf16 %v1205_v54, %v1204_v51  ;;  %v1341_v58 = vpack.c.bf16 %v1189_v56, %v1188_v55  ;;  %v1040_v51 = vld [vmem:[%s4550_s1 + $0x1d0] sm:$0xff]  ;;  %v1041_v54 = vld [vmem:[%s4550_s1 + $0x1d8] sm:$0xff] }
 0x1a0   :  { %2399 = vmatpush3.bf16.msra.mxu0 %v1271_v59  ;;  %v1202_v59 = vld [vmem:[%s4550_s1 + $0x6e0] sm:$0xff] }
 0x1a1   :  { %2400 = vmatprep.subr.bf16.mxu0 %v1278_v1  ;;  %v1348_v0 = vpack.c.bf16 %v1203_v60, %v1202_v59  ;;  %v1340_v1 = vpack.c.bf16 %v1187_v63, %v1186_v62  ;;  %v1025_v59 = vld [vmem:[%s4550_s1 + $0x158] sm:$0xff]  ;;  %v1038_v60 = vld [vmem:[%s4550_s1 + $0x1c0] sm:$0xff]  ;;  %v1039_v62 = vld [vmem:[%s4550_s1 + $0x1c8] sm:$0xff] }
 0x1a4   :  { %2401 = vmatpush3.bf16.msra.mxu0 %v1270_v2  ;;  %v1200_v2 = vld [vmem:[%s4550_s1 + $0x6d0] sm:$0xff] }
 0x1a5   :  { %2430 = vmatprep.subr.bf16.mxu0 %v1317_v7  ;;  %v1347_v6 = vpack.c.bf16 %v1201_v3, %v1200_v2  ;;  %v1339_v7 = vpack.c.bf16 %v1185_v5, %v1184_v4  ;;  %v1023_v2 = vld [vmem:[%s4550_s1 + $0x148] sm:$0xff]  ;;  %v1036_v3 = vld [vmem:[%s4550_s1 + $0x1b0] sm:$0xff]  ;;  %v1037_v4 = vld [vmem:[%s4550_s1 + $0x1b8] sm:$0xff] }
 0x1a7   :  { %1494 = vmatmul.mubr.bf16.vlgmr.msra.gmra.mxu0 %v3742_v21 }
 0x1a8   :  { %2431 = vmatpush3.bf16.msra.mxu0 %v1309_v8  ;;  %1573 = vmatprep.mubr.bf16.mxu0 %v3731_v14  ;;  %v1198_v8 = vld [vmem:[%s4550_s1 + $0x6c0] sm:$0xff] }
 0x1a9   :  { %2432 = vmatprep.subr.bf16.mxu0 %v1316_v15  ;;  %v1346_v13 = vpack.c.bf16 %v1199_v9, %v1198_v8  ;;  %v1338_v15 = vpack.c.bf16 %v1183_v12, %v1182_v11  ;;  %v1021_v8 = vld [vmem:[%s4550_s1 + $0x138] sm:$0xff]  ;;  %v1034_v9 = vld [vmem:[%s4550_s1 + $0x1a0] sm:$0xff]  ;;  %v1035_v11 = vld [vmem:[%s4550_s1 + $0x1a8] sm:$0xff] }
 0x1ac   :  { %2433 = vmatpush3.bf16.msra.mxu0 %v1308_v16  ;;  %v1196_v16 = vld [vmem:[%s4550_s1 + $0x6b0] sm:$0xff] }
 0x1ad   :  { %2434 = vmatprep.subr.bf16.mxu0 %v1315_v19  ;;  %v1345_v10 = vpack.c.bf16 %v1197_v53, %v1196_v16  ;;  %v1337_v19 = vpack.c.bf16 %v1181_v18, %v1180_v17  ;;  %v1019_v16 = vld [vmem:[%s4550_s1 + $0x128] sm:$0xff]  ;;  %v1032_v53 = vld [vmem:[%s4550_s1 + $0x190] sm:$0xff]  ;;  %v1033_v17 = vld [vmem:[%s4550_s1 + $0x198] sm:$0xff] }
 0x1b0   :  { %2435 = vmatpush3.bf16.msra.mxu0 %v1307_v20  ;;  %v1194_v20 = vld [vmem:[%s4550_s1 + $0x6a0] sm:$0xff] }
 0x1b1   :  { %2436 = vmatprep.subr.bf16.mxu0 %v1314_v24  ;;  %v1344_v23 = vpack.c.bf16 %v1195_v61, %v1194_v20  ;;  %v1336_v24 = vpack.c.bf16 %v1179_v22, %v1178_v27  ;;  %v1017_v20 = vld [vmem:[%s4550_s1 + $0x118] sm:$0xff]  ;;  %v1030_v61 = vld [vmem:[%s4550_s1 + $0x180] sm:$0xff]  ;;  %v1031_v27 = vld [vmem:[%s4550_s1 + $0x188] sm:$0xff] }
 0x1b4   :  { %2437 = vmatpush3.bf16.msra.mxu0 %v1306_v25  ;;  %v1192_v25 = vld [vmem:[%s4550_s1 + $0x690] sm:$0xff] }
 0x1b5   :  { %2438 = vmatprep.subr.bf16.mxu0 %v1313_v32  ;;  %v1343_v31 = vpack.c.bf16 %v1193_v26, %v1192_v25  ;;  %v1335_v32 = vpack.c.bf16 %v1177_v30, %v1176_v28  ;;  %v1015_v25 = vld [vmem:[%s4550_s1 + $0x108] sm:$0xff]  ;;  %v1108_v26 = vld [vmem:[%s4550_s1 + $0x3f0] sm:$0xff]  ;;  %v1109_v28 = vld [vmem:[%s4550_s1 + $0x3f8] sm:$0xff] }
 0x1b8   :  { %2439 = vmatpush3.bf16.msra.mxu0 %v1305_v33  ;;  %v1190_v33 = vld [vmem:[%s4550_s1 + $0x680] sm:$0xff] }
 0x1b9   :  { %2440 = vmatprep.subr.bf16.mxu0 %v1312_v38  ;;  %v1342_v37 = vpack.c.bf16 %v1191_v34, %v1190_v33  ;;  %v1334_v38 = vpack.c.bf16 %v1175_v36, %v1174_v52  ;;  %v1093_v33 = vld [vmem:[%s4550_s1 + $0x378] sm:$0xff]  ;;  %v1106_v34 = vld [vmem:[%s4550_s1 + $0x3e0] sm:$0xff]  ;;  %v1107_v52 = vld [vmem:[%s4550_s1 + $0x3e8] sm:$0xff] }
 0x1bc   :  { %2441 = vmatpush3.bf16.msra.mxu0 %v1304_v39  ;;  %v1028_v39 = vld [vmem:[%s4550_s1 + $0x170] sm:$0xff] }
 0x1bd   :  { %2442 = vmatprep.subr.bf16.mxu0 %v1311_v43  ;;  %v1261_v45 = vpack.c.bf16 %v1029_v29, %v1028_v39  ;;  %v1091_v39 = vld [vmem:[%s4550_s1 + $0x368] sm:$0xff]  ;;  %v1104_v29 = vld [vmem:[%s4550_s1 + $0x3d0] sm:$0xff] }
 0x1c0   :  { %2443 = vmatpush3.bf16.msra.mxu0 %v1303_v44 }
 0x1c1   :  { %2444 = vmatprep.subr.bf16.mxu0 %v1310_v49  ;;  %v1027_v49 = vld [vmem:[%s4550_s1 + $0x168] sm:$0xff] }
 0x1c2   :  { %v1260_v56 = vpack.c.bf16 %v1027_v49, %v1026_v48  ;;  %v1086_v49 = vld [vmem:[%s4550_s1 + $0x340] sm:$0xff] }
 0x1c4   :  { %2445 = vmatpush3.bf16.msra.mxu0 %v1302_v50 }
 0x1c5   :  { %2474 = vmatprep.subr.bf16.mxu0 %v1349_v57  ;;  %v1267_v57 = vpack.c.bf16 %v1041_v54, %v1040_v51  ;;  %v1100_v51 = vld [vmem:[%s4550_s1 + $0x3b0] sm:$0xff]  ;;  %v1101_v54 = vld [vmem:[%s4550_s1 + $0x3b8] sm:$0xff] }
 0x1c7   :  { %1574 = vmatmul.mubr.bf16.vlgmr.msra.gmra.mxu0 %v3742_v21 }
 0x1c8   :  { %2475 = vmatpush3.bf16.msra.mxu0 %v1341_v58  ;;  %1653 = vmatprep.mubr.bf16.mxu0 %v3731_v14  ;;  %v1024_v58 = vld [vmem:[%s4550_s1 + $0x150] sm:$0xff] }
 0x1c9   :  { %2476 = vmatprep.subr.bf16.mxu0 %v1348_v0  ;;  %v1259_v63 = vpack.c.bf16 %v1025_v59, %v1024_v58  ;;  %v1266_v0 = vpack.c.bf16 %v1039_v62, %v1038_v60  ;;  %v1085_v58 = vld [vmem:[%s4550_s1 + $0x338] sm:$0xff]  ;;  %v1098_v59 = vld [vmem:[%s4550_s1 + $0x3a0] sm:$0xff]  ;;  %v1099_v60 = vld [vmem:[%s4550_s1 + $0x3a8] sm:$0xff] }
 0x1cc   :  { %2477 = vmatpush3.bf16.msra.mxu0 %v1340_v1  ;;  %v1022_v1 = vld [vmem:[%s4550_s1 + $0x140] sm:$0xff] }
 0x1cd   :  { %2478 = vmatprep.subr.bf16.mxu0 %v1347_v6  ;;  %v1258_v5 = vpack.c.bf16 %v1023_v2, %v1022_v1  ;;  %v1265_v6 = vpack.c.bf16 %v1037_v4, %v1036_v3  ;;  %v1083_v1 = vld [vmem:[%s4550_s1 + $0x328] sm:$0xff]  ;;  %v1096_v2 = vld [vmem:[%s4550_s1 + $0x390] sm:$0xff]  ;;  %v1097_v3 = vld [vmem:[%s4550_s1 + $0x398] sm:$0xff] }
 0x1d0   :  { %2479 = vmatpush3.bf16.msra.mxu0 %v1339_v7  ;;  %v1020_v7 = vld [vmem:[%s4550_s1 + $0x130] sm:$0xff] }
 0x1d1   :  { %2480 = vmatprep.subr.bf16.mxu0 %v1346_v13  ;;  %v1257_v12 = vpack.c.bf16 %v1021_v8, %v1020_v7  ;;  %v1264_v13 = vpack.c.bf16 %v1035_v11, %v1034_v9  ;;  %v1081_v7 = vld [vmem:[%s4550_s1 + $0x318] sm:$0xff]  ;;  %v1094_v8 = vld [vmem:[%s4550_s1 + $0x380] sm:$0xff]  ;;  %v1095_v9 = vld [vmem:[%s4550_s1 + $0x388] sm:$0xff] }
 0x1d4   :  { %2481 = vmatpush3.bf16.msra.mxu0 %v1338_v15  ;;  %v1018_v15 = vld [vmem:[%s4550_s1 + $0x120] sm:$0xff] }
 0x1d5   :  { %2482 = vmatprep.subr.bf16.mxu0 %v1345_v10  ;;  %v1256_v18 = vpack.c.bf16 %v1019_v16, %v1018_v15  ;;  %v1263_v10 = vpack.c.bf16 %v1033_v17, %v1032_v53  ;;  %v1079_v15 = vld [vmem:[%s4550_s1 + $0x308] sm:$0xff]  ;;  %v1172_v16 = vld [vmem:[%s4550_s1 + $0x5f0] sm:$0xff]  ;;  %v1173_v53 = vld [vmem:[%s4550_s1 + $0x5f8] sm:$0xff] }
 0x1d8   :  { %2483 = vmatpush3.bf16.msra.mxu0 %v1337_v19  ;;  %v1016_v19 = vld [vmem:[%s4550_s1 + $0x110] sm:$0xff] }
 0x1d9   :  { %2484 = vmatprep.subr.bf16.mxu0 %v1344_v23  ;;  %v1255_v22 = vpack.c.bf16 %v1017_v20, %v1016_v19  ;;  %v1262_v23 = vpack.c.bf16 %v1031_v27, %v1030_v61  ;;  %v1157_v19 = vld [vmem:[%s4550_s1 + $0x578] sm:$0xff]  ;;  %v1170_v20 = vld [vmem:[%s4550_s1 + $0x5e0] sm:$0xff]  ;;  %v1171_v61 = vld [vmem:[%s4550_s1 + $0x5e8] sm:$0xff] }
 0x1dc   :  { %2485 = vmatpush3.bf16.msra.mxu0 %v1336_v24  ;;  %v1014_v24 = vld [vmem:[%s4550_s1 + $0x100] sm:$0xff] }
 0x1dd   :  { %2486 = vmatprep.subr.bf16.mxu0 %v1343_v31  ;;  %v1254_v30 = vpack.c.bf16 %v1015_v25, %v1014_v24  ;;  %v1301_v31 = vpack.c.bf16 %v1109_v28, %v1108_v26  ;;  %v1155_v24 = vld [vmem:[%s4550_s1 + $0x568] sm:$0xff]  ;;  %v1168_v25 = vld [vmem:[%s4550_s1 + $0x5d0] sm:$0xff]  ;;  %v1169_v26 = vld [vmem:[%s4550_s1 + $0x5d8] sm:$0xff] }
 0x1e0   :  { %2487 = vmatpush3.bf16.msra.mxu0 %v1335_v32  ;;  %v1092_v32 = vld [vmem:[%s4550_s1 + $0x370] sm:$0xff] }
 0x1e1   :  { %2488 = vmatprep.subr.bf16.mxu0 %v1342_v37  ;;  %v1293_v36 = vpack.c.bf16 %v1093_v33, %v1092_v32  ;;  %v1300_v37 = vpack.c.bf16 %v1107_v52, %v1106_v34  ;;  %v1153_v32 = vld [vmem:[%s4550_s1 + $0x558] sm:$0xff]  ;;  %v1166_v33 = vld [vmem:[%s4550_s1 + $0x5c0] sm:$0xff]  ;;  %v1167_v34 = vld [vmem:[%s4550_s1 + $0x5c8] sm:$0xff] }
 0x1e4   :  { %2489 = vmatpush3.bf16.msra.mxu0 %v1334_v38  ;;  %v1090_v38 = vld [vmem:[%s4550_s1 + $0x360] sm:$0xff] }
 0x1e5   :  { %2560 = vmatprep.subr.bf16.mxu0 %v2678_v35  ;;  %v1292_v41 = vpack.c.bf16 %v1091_v39, %v1090_v38  ;;  %v1151_v38 = vld [vmem:[%s4550_s1 + $0x548] sm:$0xff] }
 0x1e7   :  { %1654 = vmatmul.mubr.bf16.vlgmr.msra.gmra.mxu0 %v3742_v21 }
 0x1e8   :  { %2568 = vmatprep.mubr.msk.bf16.mxu0 %vm2679_vm0, %v2678_v35 }
 0x227   :  { %v883_v40 = vpop.f32.mrf.mxu0 }
 0x228   :  { %v889_v43 = vmax.f32 %v883_v40, 0.0  ;;  %v1105_v40 = vld [vmem:[%s4550_s1 + $0x3d8] sm:$0xff] }
 0x229   :  { %v2546_v44 = vpop.f32.mrf.mxu0  ;;  %v1299_v42 = vpack.c.bf16 %v1105_v40, %v1104_v29  ;;  %v1164_v29 = vld [vmem:[%s4550_s1 + $0x5b0] sm:$0xff]  ;;  %v1165_v40 = vld [vmem:[%s4550_s1 + $0x5b8] sm:$0xff] }
 0x22a   :  { %v890_v46 = vpack.c.bf16 %v889_v43, %v889_v43  ;;  %v1088_v43 = vld [vmem:[%s4550_s1 + $0x350] sm:$0xff]  ;;  %v1089_v44 = vld [vmem:[%s4550_s1 + $0x358] sm:$0xff] }
 0x22b   :  { %v886_v50 = vpop.f32.mrf.mxu0 }
 0x22c   :  { %2557 = vmatmul.mubr.msk.bf16.vlgmr.msra.gmra.mxu1 %vm845_vm8, %v890_v46  ;;  %v1103_v46 = vld [vmem:[%s4550_s1 + $0x3c8] sm:$0xff] }
 0x22d   :  { %2365 = vmatpush3.bf16.msra.mxu1 %v1261_v45  ;;  %v2547_v55 = vpop.f32.mrf.mxu0  ;;  %1453 = vmatprep.mubr.bf16.mxu1 %v3731_v14  ;;  %v1102_v45 = vld [vmem:[%s4550_s1 + $0x3c0] sm:$0xff]  ;;  %v1087_v50 = vld [vmem:[%s4550_s1 + $0x348] sm:$0xff] }
 0x22e   :  { %2366 = vmatprep.subr.bf16.mxu1 %v1268_v47  ;;  %v1291_v47 = vpack.c.bf16 %v1089_v44, %v1088_v43  ;;  %v1298_v48 = vpack.c.bf16 %v1103_v46, %v1102_v45  ;;  %v1290_v55 = vpack.c.bf16 %v1087_v50, %v1086_v49  ;;  %v1329_v44 = vpack.c.bf16 %v1165_v40, %v1164_v29  ;;  %v1148_v45 = vld [vmem:[%s4550_s1 + $0x530] sm:$0xff]  ;;  %v1149_v46 = vld [vmem:[%s4550_s1 + $0x538] sm:$0xff]  ;;  %v1163_v49 = vld [vmem:[%s4550_s1 + $0x5a8] sm:$0xff] }
 0x22f   :  { %v1213_v29 = vld [vmem:[%s4550_s1 + $0x738] sm:$0xff]  ;;  %v1226_v40 = vld [vmem:[%s4550_s1 + $0x7a0] sm:$0xff] }
 0x231   :  { %2367 = vmatpush3.bf16.msra.mxu1 %v1260_v56  ;;  %v1297_v56 = vpack.c.bf16 %v1101_v54, %v1100_v51  ;;  %v1321_v51 = vpack.c.bf16 %v1149_v46, %v1148_v45  ;;  %v1210_v45 = vld [vmem:[%s4550_s1 + $0x720] sm:$0xff]  ;;  %v1211_v46 = vld [vmem:[%s4550_s1 + $0x728] sm:$0xff] }
 0x232   :  { %2368 = vmatprep.subr.bf16.mxu1 %v1267_v57  ;;  %v1084_v57 = vld [vmem:[%s4550_s1 + $0x330] sm:$0xff] }
 0x233   :  { %v1289_v62 = vpack.c.bf16 %v1085_v58, %v1084_v57  ;;  %v1160_v57 = vld [vmem:[%s4550_s1 + $0x590] sm:$0xff]  ;;  %v1161_v58 = vld [vmem:[%s4550_s1 + $0x598] sm:$0xff] }
 0x235   :  { %2369 = vmatpush3.bf16.msra.mxu1 %v1259_v63  ;;  %v1296_v63 = vpack.c.bf16 %v1099_v60, %v1098_v59  ;;  %v1327_v60 = vpack.c.bf16 %v1161_v58, %v1160_v57 }
 0x236   :  { %2370 = vmatprep.subr.bf16.mxu1 %v1266_v0  ;;  %v1082_v0 = vld [vmem:[%s4550_s1 + $0x320] sm:$0xff] }
 0x237   :  { %v1288_v4 = vpack.c.bf16 %v1083_v1, %v1082_v0  ;;  %v1158_v0 = vld [vmem:[%s4550_s1 + $0x580] sm:$0xff]  ;;  %v1159_v1 = vld [vmem:[%s4550_s1 + $0x588] sm:$0xff] }
 0x239   :  { %2371 = vmatpush3.bf16.msra.mxu1 %v1258_v5  ;;  %v1295_v5 = vpack.c.bf16 %v1097_v3, %v1096_v2  ;;  %v1326_v3 = vpack.c.bf16 %v1159_v1, %v1158_v0 }
 0x23a   :  { %2372 = vmatprep.subr.bf16.mxu1 %v1265_v6  ;;  %v1080_v6 = vld [vmem:[%s4550_s1 + $0x310] sm:$0xff] }
 0x23b   :  { %v1287_v11 = vpack.c.bf16 %v1081_v7, %v1080_v6  ;;  %v1236_v6 = vld [vmem:[%s4550_s1 + $0x7f0] sm:$0xff]  ;;  %v1237_v7 = vld [vmem:[%s4550_s1 + $0x7f8] sm:$0xff] }
 0x23d   :  { %2373 = vmatpush3.bf16.msra.mxu1 %v1257_v12  ;;  %v1294_v12 = vpack.c.bf16 %v1095_v9, %v1094_v8  ;;  %v1365_v9 = vpack.c.bf16 %v1237_v7, %v1236_v6 }
 0x23e   :  { %2374 = vmatprep.subr.bf16.mxu1 %v1264_v13  ;;  %v1078_v13 = vld [vmem:[%s4550_s1 + $0x300] sm:$0xff] }
 0x23f   :  { %v1286_v17 = vpack.c.bf16 %v1079_v15, %v1078_v13  ;;  %v1234_v13 = vld [vmem:[%s4550_s1 + $0x7e0] sm:$0xff]  ;;  %v1235_v15 = vld [vmem:[%s4550_s1 + $0x7e8] sm:$0xff] }
 0x241   :  { %2375 = vmatpush3.bf16.msra.mxu1 %v1256_v18  ;;  %v1333_v18 = vpack.c.bf16 %v1173_v53, %v1172_v16  ;;  %v1364_v53 = vpack.c.bf16 %v1235_v15, %v1234_v13 }
 0x242   :  { %2376 = vmatprep.subr.bf16.mxu1 %v1263_v10  ;;  %v1156_v10 = vld [vmem:[%s4550_s1 + $0x570] sm:$0xff] }
 0x243   :  { %v1325_v27 = vpack.c.bf16 %v1157_v19, %v1156_v10  ;;  %v1232_v10 = vld [vmem:[%s4550_s1 + $0x7d0] sm:$0xff]  ;;  %v1233_v19 = vld [vmem:[%s4550_s1 + $0x7d8] sm:$0xff] }
 0x245   :  { %2377 = vmatpush3.bf16.msra.mxu1 %v1255_v22  ;;  %v1332_v22 = vpack.c.bf16 %v1171_v61, %v1170_v20  ;;  %v1363_v61 = vpack.c.bf16 %v1233_v19, %v1232_v10  ;;  %v2132_v10 = vld [vmem:[%s4552_s3 + $0x50] sm:$0xff]  ;;  %v2133_v19 = vld [vmem:[%s4552_s3 + $0x58] sm:$0xff] }
 0x246   :  { %2378 = vmatprep.subr.bf16.mxu1 %v1262_v23  ;;  %v1154_v23 = vld [vmem:[%s4550_s1 + $0x560] sm:$0xff] }
 0x247   :  { %v1324_v28 = vpack.c.bf16 %v1155_v24, %v1154_v23  ;;  %v2358_v39 = vpop.f32.mrf.mxu0  ;;  %v1230_v24 = vld [vmem:[%s4550_s1 + $0x7c0] sm:$0xff] }
 0x249   :  { %2379 = vmatpush3.bf16.msra.mxu1 %v1254_v30  ;;  %v1331_v30 = vpack.c.bf16 %v1169_v26, %v1168_v25  ;;  %v1231_v25 = vld [vmem:[%s4550_s1 + $0x7c8] sm:$0xff] }
 0x24a   :  { %2408 = vmatprep.subr.bf16.mxu1 %v1301_v31  ;;  %v1152_v31 = vld [vmem:[%s4550_s1 + $0x550] sm:$0xff] }
 0x24b   :  { %v1323_v52 = vpack.c.bf16 %v1153_v32, %v1152_v31  ;;  %v1214_v31 = vld [vmem:[%s4550_s1 + $0x740] sm:$0xff]  ;;  %v1215_v32 = vld [vmem:[%s4550_s1 + $0x748] sm:$0xff] }
 0x24c   :  { %1454 = vmatmul.mubr.bf16.vlgmr.msra.gmra.mxu1 %v3742_v21 }
 0x24d   :  { %2409 = vmatpush3.bf16.msra.mxu1 %v1293_v36  ;;  %1533 = vmatprep.mubr.bf16.mxu1 %v3731_v14  ;;  %v1330_v36 = vpack.c.bf16 %v1167_v34, %v1166_v33  ;;  %v1228_v34 = vld [vmem:[%s4550_s1 + $0x7b0] sm:$0xff] }
 0x24e   :  { %2410 = vmatprep.subr.bf16.mxu1 %v1300_v37  ;;  %v1150_v37 = vld [vmem:[%s4550_s1 + $0x540] sm:$0xff] }
 0x251   :  { %2411 = vmatpush3.bf16.msra.mxu1 %v1292_v41  ;;  %v2359_v41 = vpop.f32.mrf.mxu0 }
 0x252   :  { %2412 = vmatprep.subr.bf16.mxu1 %v1299_v42  ;;  %v1322_v42 = vpack.c.bf16 %v1151_v38, %v1150_v37  ;;  %v4277_v43 = vadd.f32 %v2359_v41, %v2358_v39  ;;  %v1354_v37 = vpack.c.bf16 %v1215_v32, %v1214_v31  ;;  %v1212_v39 = vld [vmem:[%s4550_s1 + $0x730] sm:$0xff]  ;;  %v1227_v41 = vld [vmem:[%s4550_s1 + $0x7a8] sm:$0xff]  ;;  %v2142_v32 = vld [vmem:[%s4553_s4 + $0x58] sm:$0xff] }
 0x253   :  { %v2141_v31 = vld [vmem:[%s4553_s4 + $0x50] sm:$0xff] }
 0x255   :  { %2413 = vmatpush3.bf16.msra.mxu1 %v1291_v47  ;;  %v2361_v47 = vpop.f32.mrf.mxu0 }
 0x256   :  { %2414 = vmatprep.subr.bf16.mxu1 %v1298_v48  ;;  %v1162_v48 = vld [vmem:[%s4550_s1 + $0x5a0] sm:$0xff]  ;;  %v1224_v47 = vld [vmem:[%s4550_s1 + $0x790] sm:$0xff] }
 0x257   :  { %v2362_v50 = vpop.f32.mrf.mxu0  ;;  %v1328_v54 = vpack.c.bf16 %v1163_v49, %v1162_v48  ;;  %v1225_v48 = vld [vmem:[%s4550_s1 + $0x798] sm:$0xff]  ;;  %v1352_v49 = vpack.c.bf16 %v1211_v46, %v1210_v45 }
 0x258   :  { %v1359_v50 = vpack.c.bf16 %v1225_v48, %v1224_v47 }
 0x259   :  { %2415 = vmatpush3.bf16.msra.mxu1 %v1290_v55  ;;  %v1146_v55 = vld [vmem:[%s4550_s1 + $0x520] sm:$0xff] }
 0x25a   :  { %2416 = vmatprep.subr.bf16.mxu1 %v1297_v56  ;;  %v1147_v56 = vld [vmem:[%s4550_s1 + $0x528] sm:$0xff] }
 0x25b   :  { %v1320_v59 = vpack.c.bf16 %v1147_v56, %v1146_v55  ;;  %v1222_v55 = vld [vmem:[%s4550_s1 + $0x780] sm:$0xff]  ;;  %v1223_v56 = vld [vmem:[%s4550_s1 + $0x788] sm:$0xff] }
 0x25c   :  { %v1358_v58 = vpack.c.bf16 %v1223_v56, %v1222_v55 }
 0x25d   :  { %2417 = vmatpush3.bf16.msra.mxu1 %v1289_v62  ;;  %v1144_v62 = vld [vmem:[%s4550_s1 + $0x510] sm:$0xff] }
 0x25e   :  { %2418 = vmatprep.subr.bf16.mxu1 %v1296_v63  ;;  %v1145_v63 = vld [vmem:[%s4550_s1 + $0x518] sm:$0xff] }
 0x25f   :  { %v1319_v2 = vpack.c.bf16 %v1145_v63, %v1144_v62 }
 0x261   :  { %2419 = vmatpush3.bf16.msra.mxu1 %v1288_v4  ;;  %v1142_v4 = vld [vmem:[%s4550_s1 + $0x500] sm:$0xff] }
 0x262   :  { %2420 = vmatprep.subr.bf16.mxu1 %v1295_v5  ;;  %v1143_v5 = vld [vmem:[%s4550_s1 + $0x508] sm:$0xff] }
 0x263   :  { %v1318_v8 = vpack.c.bf16 %v1143_v5, %v1142_v4 }
 0x265   :  { %2421 = vmatpush3.bf16.msra.mxu1 %v1287_v11  ;;  %v1220_v11 = vld [vmem:[%s4550_s1 + $0x770] sm:$0xff] }
 0x266   :  { %2422 = vmatprep.subr.bf16.mxu1 %v1294_v12  ;;  %v1221_v12 = vld [vmem:[%s4550_s1 + $0x778] sm:$0xff] }
 0x267   :  { %v1357_v16 = vpack.c.bf16 %v1221_v12, %v1220_v11  ;;  %v2402_v23 = vpop.f32.mrf.mxu0  ;;  %v2137_v11 = vld [vmem:[%s4552_s3 + $0x78] sm:$0xff] }
 0x269   :  { %2423 = vmatpush3.bf16.msra.mxu1 %v1286_v17  ;;  %v1218_v17 = vld [vmem:[%s4550_s1 + $0x760] sm:$0xff] }
 0x26a   :  { %2452 = vmatprep.subr.bf16.mxu1 %v1333_v18  ;;  %v1219_v18 = vld [vmem:[%s4550_s1 + $0x768] sm:$0xff] }
 0x26b   :  { %v1356_v20 = vpack.c.bf16 %v1219_v18, %v1218_v17 }
 0x26c   :  { %1534 = vmatmul.mubr.bf16.vlgmr.msra.gmra.mxu1 %v3742_v21 }
 0x26d   :  { %2453 = vmatpush3.bf16.msra.mxu1 %v1325_v27  ;;  %1613 = vmatprep.mubr.bf16.mxu1 %v3731_v14  ;;  %v1216_v27 = vld [vmem:[%s4550_s1 + $0x750] sm:$0xff] }
 0x26e   :  { %2454 = vmatprep.subr.bf16.mxu1 %v1332_v22  ;;  %v1217_v22 = vld [vmem:[%s4550_s1 + $0x758] sm:$0xff] }
 0x26f   :  { %v1355_v26 = vpack.c.bf16 %v1217_v22, %v1216_v27  ;;  %v2131_v27 = vld [vmem:[%s4552_s3 + $0x48] sm:$0xff] }
 0x271   :  { %2455 = vmatpush3.bf16.msra.mxu1 %v1324_v28 }
 0x272   :  { %2456 = vmatprep.subr.bf16.mxu1 %v1331_v30  ;;  %v1362_v30 = vpack.c.bf16 %v1231_v25, %v1230_v24  ;;  %v2146_v24 = vld [vmem:[%s4553_s4 + $0x78] sm:$0xff]  ;;  %v2143_v25 = vld [vmem:[%s4553_s4 + $0x60] sm:$0xff] }
 0x275   :  { %2457 = vmatpush3.bf16.msra.mxu1 %v1323_v52  ;;  %v1229_v52 = vld [vmem:[%s4550_s1 + $0x7b8] sm:$0xff] }
 0x276   :  { %2458 = vmatprep.subr.bf16.mxu1 %v1330_v36  ;;  %v1361_v38 = vpack.c.bf16 %v1229_v52, %v1228_v34  ;;  %v1702_v34 = vstv %s2129_s24 }
 0x279   :  { %2459 = vmatpush3.bf16.msra.mxu1 %v1322_v42  ;;  %v1353_v42 = vpack.c.bf16 %v1213_v29, %v1212_v39 }
 0x27a   :  { %2460 = vmatprep.subr.bf16.mxu1 %v1329_v44  ;;  %v1360_v44 = vpack.c.bf16 %v1227_v41, %v1226_v40 }
 0x27d   :  { %2461 = vmatpush3.bf16.msra.mxu1 %v1321_v51  ;;  %v1208_v51 = vld [vmem:[%s4550_s1 + $0x710] sm:$0xff] }
 0x27e   :  { %2462 = vmatprep.subr.bf16.mxu1 %v1328_v54  ;;  %v1209_v54 = vld [vmem:[%s4550_s1 + $0x718] sm:$0xff] }
 0x27f   :  { %v1351_v57 = vpack.c.bf16 %v1209_v54, %v1208_v51 }
 0x281   :  { %2463 = vmatpush3.bf16.msra.mxu1 %v1320_v59  ;;  %v1206_v59 = vld [vmem:[%s4550_s1 + $0x700] sm:$0xff] }
 0x282   :  { %2464 = vmatprep.subr.bf16.mxu1 %v1327_v60  ;;  %v1207_v60 = vld [vmem:[%s4550_s1 + $0x708] sm:$0xff] }
 0x283   :  { %v1350_v62 = vpack.c.bf16 %v1207_v60, %v1206_v59 }
 0x285   :  { %2465 = vmatpush3.bf16.msra.mxu1 %v1319_v2 }
 0x286   :  { %2466 = vmatprep.subr.bf16.mxu1 %v1326_v3 }
 0x289   :  { %2467 = vmatpush3.bf16.msra.mxu1 %v1318_v8 }
 0x28a   :  { %2496 = vmatprep.subr.bf16.mxu1 %v1365_v9 }
 0x28c   :  { %1614 = vmatmul.mubr.bf16.vlgmr.msra.gmra.mxu1 %v3742_v21 }
 0x28d   :  { %2497 = vmatpush3.bf16.msra.mxu1 %v1357_v16  ;;  %1693 = vmatprep.mubr.bf16.mxu1 %v3731_v14  ;;  %v2403_v14 = vpop.f32.mrf.mxu0  ;;  %v2134_v16 = vld [vmem:[%s4552_s3 + $0x60] sm:$0xff] }
 0x28e   :  { %2498 = vmatprep.subr.bf16.mxu1 %v1364_v53  ;;  %v4365_v28 = vadd.f32 %v2403_v14, %v2402_v23  ;;  %v2135_v53 = vld [vmem:[%s4552_s3 + $0x68] sm:$0xff]  ;;  %v2145_v23 = vld [vmem:[%s4553_s4 + $0x70] sm:$0xff] }
 0x28f   :  { %v2405_v33 = vpop.f32.mrf.mxu0  ;;  %v1738_v17 = vpack.c.bf16 %v2135_v53, %v2134_v16  ;;  %v1828_v14 = vpack.c.bf16 %v2146_v24, %v2145_v23 }
 0x290   :  { %v1826_v33 = vpack.c.bf16 %v2142_v32, %v2141_v31  ;;  %v1705_v52 = vadd.f32 %v4365_v28, %v1702_v34 }
 0x291   :  { %2499 = vmatpush3.bf16.msra.mxu1 %v1356_v20  ;;  %v2406_v36 = vpop.f32.mrf.mxu0  ;;  %v1737_v20 = vpack.c.bf16 %v2133_v19, %v2132_v10 }
 0x292   :  { %2500 = vmatprep.subr.bf16.mxu1 %v1363_v61  ;;  %v2130_v61 = vld [vmem:[%s4552_s3 + $0x40] sm:$0xff] }
 0x293   :  { %v2446_v63 = vpop.f32.mrf.mxu0  ;;  %v1736_v22 = vpack.c.bf16 %v2131_v27, %v2130_v61 }
 0x295   :  { %2501 = vmatpush3.bf16.msra.mxu1 %v1355_v26  ;;  %v2447_v0 = vpop.f32.mrf.mxu0  ;;  %v2144_v26 = vld [vmem:[%s4553_s4 + $0x68] sm:$0xff] }
 0x296   :  { %2502 = vmatprep.subr.bf16.mxu1 %v1362_v30  ;;  %v4425_v1 = vadd.f32 %v2447_v0, %v2446_v63  ;;  %v1827_v30 = vpack.c.bf16 %v2144_v26, %v2143_v25 }
 0x297   :  { %v2449_v2 = vpop.f32.mrf.mxu0 }
 0x299   :  { %2503 = vmatpush3.bf16.msra.mxu1 %v1354_v37  ;;  %v2450_v3 = vpop.f32.mrf.mxu0  ;;  %v1713_v37 = vmax.f32 %v1705_v52, 0.0 }
 0x29a   :  { %2504 = vmatprep.subr.bf16.mxu1 %v1361_v38  ;;  %v1703_v38 = vadd.f32 %v4277_v43, %v1702_v34  ;;  %v1707_v43 = vadd.f32 %v4425_v1, %v1702_v34 }
 0x29b   :  { %v1721_v40 = vpack.c.bf16 %v1713_v37, %v1713_v37 }
 0x29d   :  { %2505 = vmatpush3.bf16.msra.mxu1 %v1353_v42  ;;  %v1711_v42 = vmax.f32 %v1703_v38, 0.0  ;;  %v1750_v47 = vunpack.c.l.b16 %v1721_v40  ;;  %v2139_v40 = vld [vmem:[%s4553_s4 + $0x40] sm:$0xff] }
 0x29e   :  { %2506 = vmatprep.subr.bf16.mxu1 %v1360_v44 }
 0x29f   :  { %v1719_v48 = vpack.c.bf16 %v1711_v42, %v1711_v42  ;;  %v1758_v28 = vrot.slane %v1750_v47, 6 }
 0x2a1   :  { %2507 = vmatpush3.bf16.msra.mxu1 %v1352_v49  ;;  %v1748_v51 = vunpack.c.l.b16 %v1719_v48 }
 0x2a2   :  { %2508 = vmatprep.subr.bf16.mxu1 %v1359_v50 }
 0x2a5   :  { %2509 = vmatpush3.bf16.msra.mxu1 %v1351_v57 }
 0x2a6   :  { %2510 = vmatprep.subr.bf16.mxu1 %v1358_v58  ;;  %v1715_v58 = vmax.f32 %v1707_v43, 0.0 }
 0x2a7   :  { %v2490_v4 = vpop.f32.mrf.mxu0 }
 0x2a9   :  { %2511 = vmatpush3.bf16.msra.mxu1 %v1350_v62  ;;  %v2491_v5 = vpop.f32.mrf.mxu0  ;;  %v1723_v62 = vpack.c.bf16 %v1715_v58, %v1715_v58 }
 0x2aa   :  { %2572 = vmatprep.subr.bf16.mxu1 %v2678_v35  ;;  %v4427_v6 = vadd.f32 %v2491_v5, %v2490_v4 }
 0x2ab   :  { %v2493_v7 = vpop.f32.mrf.mxu0  ;;  %v1752_v4 = vunpack.c.l.b16 %v1723_v62 }
 0x2ac   :  { %1694 = vmatmul.mubr.bf16.vlgmr.msra.gmra.mxu1 %v3742_v21  ;;  %v2136_v21 = vld [vmem:[%s4552_s3 + $0x70] sm:$0xff]  ;;  %v1709_v1 = vadd.f32 %v4427_v6, %v1702_v34 }
 0x2ad   :  { %2580 = vmatprep.mubr.msk.bf16.mxu1 %vm2679_vm0, %v2678_v35  ;;  %v2494_v8 = vpop.f32.mrf.mxu0  ;;  %v1739_v12 = vpack.c.bf16 %v2137_v11, %v2136_v21  ;;  %2573 = vmatpush3.bf16.msra.mxu1 %v1828_v14 }
 0x2ae   :  { %2574 = vmatprep.subr.bf16.mxu1 %v2678_v35  ;;  %v1762_v8 = vrot.slane %v1752_v4, 4 }
 0x2af   :  { %2561 = vmatpush3.bf16.msra.mxu0 %v1739_v12 }
 0x2b0   :  { %2562 = vmatprep.subr.bf16.mxu0 %v2678_v35 }
 0x2b1   :  { %2575 = vmatpush3.bf16.msra.mxu1 %v1827_v30 }
 0x2b2   :  { %2576 = vmatprep.subr.bf16.mxu1 %v2678_v35 }
 0x2b3   :  { %2563 = vmatpush3.bf16.msra.mxu0 %v1738_v17 }
 0x2b4   :  { %2564 = vmatprep.subr.bf16.mxu0 %v2678_v35 }
 0x2b5   :  { %2577 = vmatpush3.bf16.msra.mxu1 %v1826_v33 }
 0x2b6   :  { %2578 = vmatprep.subr.bf16.mxu1 %v2678_v35 }
 0x2b7   :  { %2565 = vmatpush3.bf16.msra.mxu0 %v1737_v20 }
 0x2b8   :  { %2566 = vmatprep.subr.bf16.mxu0 %v2678_v35 }
 0x2bb   :  { %2567 = vmatpush3.bf16.msra.mxu0 %v1736_v22 }
 0x2bc   :  { %2584 = vmatprep.subr.bf16.mxu0 %v2678_v35 }
 0x2ec   :  { %v4429_v9 = vpop.f32.mrf.mxu1 }
 0x2ee   :  { %v2558_v13 = vpop.f32.mrf.mxu1 }
 0x2f0   :  { %v943_v15 = vpop.f32.mrf.mxu1 }
 0x2f1   :  { %v1717_v15 = vmax.f32 %v1709_v1, 0.0  ;;  %v2151_v1 = vld [vmem:[%s4555_s6 + $0x1] ss:$0 sm:$0xff] }
 0x2f2   :  { %v2559_v18 = vpop.f32.mrf.mxu1 }
 0x2f3   :  { %v1725_v17 = vpack.c.bf16 %v1717_v15, %v1717_v15 }
 0x2f5   :  { %v1754_v61 = vunpack.c.l.b16 %v1725_v17 }
 0x2f7   :  { %v1766_v23 = vrot.slane %v1754_v61, 2 }
 0x30c   :  { %v2380_v36 = vpop.f32.mrf.mxu1 }
 0x30e   :  { %v2381_v39 = vpop.f32.mrf.mxu1 }
 0x30f   :  { %v2382_v29 = vadd.f32 %v2381_v39, %v2380_v36 }
 0x310   :  { %v2383_v41 = vpop.f32.mrf.mxu1 }
 0x311   :  { %v1704_v44 = vadd.f32 %v2382_v29, %v1702_v34 }
 0x312   :  { %v2384_v45 = vpop.f32.mrf.mxu1 }
 0x313   :  { %v1712_v46 = vmax.f32 %v1704_v44, 0.0 }
 0x315   :  { %v1720_v49 = vpack.c.bf16 %v1712_v46, %v1712_v46 }
 0x317   :  { %v1749_v50 = vunpack.c.l.b16 %v1720_v49 }
 0x319   :  { %v1756_v54 = vrot.slane %v1749_v50, 7 }
 0x31b   :  { %v1757_v55 = vsel %vm824_vm1, %v1756_v54, %v1748_v51  ;;  %v947_v54 = vsel %vm946_vm9, %v4429_v9, 0.0 }
 0x31c   :  { %v1759_v56 = vsel %vm827_vm2, %v1758_v28, %v1757_v55 }
 0x32c   :  { %v2424_v57 = vpop.f32.mrf.mxu1 }
 0x32e   :  { %v2425_v59 = vpop.f32.mrf.mxu1 }
 0x32f   :  { %v2426_v60 = vadd.f32 %v2425_v59, %v2424_v57 }
 0x330   :  { %v2427_v63 = vpop.f32.mrf.mxu1 }
 0x331   :  { %v1706_v0 = vadd.f32 %v2426_v60, %v1702_v34 }
 0x332   :  { %v2428_v2 = vpop.f32.mrf.mxu1 }
 0x333   :  { %v1714_v3 = vmax.f32 %v1706_v0, 0.0 }
 0x335   :  { %v1722_v5 = vpack.c.bf16 %v1714_v3, %v1714_v3 }
 0x337   :  { %v1751_v7 = vunpack.c.l.b16 %v1722_v5 }
 0x339   :  { %v1760_v21 = vrot.slane %v1751_v7, 5 }
 0x33b   :  { %v1761_v11 = vsel %vm830_vm3, %v1760_v21, %v1759_v56 }
 0x33c   :  { %v1763_v12 = vsel %vm833_vm4, %v1762_v8, %v1761_v11 }
 0x34c   :  { %v2468_v13 = vpop.f32.mrf.mxu1 }
 0x34e   :  { %v2469_v16 = vpop.f32.mrf.mxu1 }
 0x34f   :  { %v2470_v53 = vadd.f32 %v2469_v16, %v2468_v13  ;;  %v2126_v16 = vld [vmem:[%s4554_s5] ss:$0 sm:$0xff] }
 0x350   :  { %v2471_v18 = vpop.f32.mrf.mxu1 }
 0x351   :  { %v1708_v10 = vadd.f32 %v2470_v53, %v1702_v34  ;;  %v2127_v18 = vld [vmem:[%s4555_s6] ss:$0 sm:$0xff] }
 0x352   :  { %v2472_v19 = vpop.f32.mrf.mxu1 }
 0x353   :  { %v1716_v20 = vmax.f32 %v1708_v10, 0.0 }
 0x355   :  { %v1724_v27 = vpack.c.bf16 %v1716_v20, %v1716_v20 }
 0x357   :  { %v1753_v22 = vunpack.c.l.b16 %v1724_v27 }
 0x359   :  { %v1764_v24 = vrot.slane %v1753_v22, 3 }
 0x35b   :  { %v1765_v25 = vsel %vm836_vm5, %v1764_v24, %v1763_v12 }
 0x35c   :  { %v1767_v14 = vsel %vm839_vm6, %v1766_v23, %v1765_v25 }
 0x36c   :  { %v2512_v26 = vpop.f32.mrf.mxu1 }
 0x36e   :  { %v2513_v6 = vpop.f32.mrf.mxu1 }
 0x36f   :  { %v2514_v30 = vadd.f32 %v2513_v6, %v2512_v26 }
 0x370   :  { %v2515_v31 = vpop.f32.mrf.mxu1 }
 0x371   :  { %v1710_v32 = vadd.f32 %v2514_v30, %v1702_v34  ;;  %v2140_v34 = vld [vmem:[%s4553_s4 + $0x48] sm:$0xff]  ;;  %v2081_v30 = vstv %s4557_s8 }
 0x372   :  { %v2516_v33 = vpop.f32.mrf.mxu1  ;;  %v1825_v41 = vpack.c.bf16 %v2140_v34, %v2139_v40 }
 0x373   :  { %v1718_v52 = vmax.f32 %v1710_v32, 0.0 }
 0x374   :  { %2579 = vmatpush3.bf16.msra.mxu1 %v1825_v41 }
 0x375   :  { %v1726_v36 = vpack.c.bf16 %v1718_v52, %v1718_v52  ;;  %2590 = vmatprep.subr.bf16.mxu1 %v2678_v35 }
 0x377   :  { %v1755_v37 = vunpack.c.l.b16 %v1726_v36 }
 0x379   :  { %v1768_v38 = vrot.slane %v1755_v37, 1 }
 0x37b   :  { %v1769_v39 = vsel %vm842_vm7, %v1768_v38, %v1767_v14 }
 0x37c   :  { %v1770_v29 = vpack.c.b16 %v1769_v39, %v1769_v39 }
 0x37e   :  { %2569 = vmatmul.mubr.msk.bf16.vlgmr.msra.gmra.mxu0 %vm845_vm8, %v1770_v29 }
 0x37f   :  { %2586 = vmatprep.mubr.msk.bf16.mxu0 %vm2679_vm0, %v2678_v35 }
 0x43e   :  { %v1808_v42 = vpop.f32.mrf.mxu0 }
 0x43f   :  { %v1814_v44 = vmax.f32 %v1808_v42, 0.0 }
 0x440   :  { %v2570_v45 = vpop.f32.mrf.mxu0 }
 0x441   :  { %v1815_v46 = vpack.c.bf16 %v1814_v44, %v1814_v44 }
 0x442   :  { %v1811_v47 = vpop.f32.mrf.mxu0 }
 0x443   :  { %2581 = vmatmul.mubr.msk.bf16.vlgmr.msra.gmra.mxu1 %vm845_vm8, %v1815_v46 }
 0x444   :  { %v2571_v48 = vpop.f32.mrf.mxu0  ;;  %2592 = vmatprep.mubr.msk.bf16.mxu1 %vm2679_vm0, %v2678_v35 }
 0x503   :  { %v1866_v49 = vpop.f32.mrf.mxu1 }
 0x504   :  { %v1872_v50 = vsel %vm946_vm9, %v1866_v49, 0.0 }
 0x505   :  { %1873 = vadd.xlane.f32.xlu0 %v1872_v50  ;;  %v2582_v28 = vpop.f32.mrf.mxu1 }
 0x507   :  { %v1869_v51 = vpop.f32.mrf.mxu1 }
 0x509   :  { %948 = vadd.xlane.f32.xlu0 %v947_v54  ;;  %v2583_v55 = vpop.f32.mrf.mxu1 }
 0x58e   :  { %v1874_v56 = vpop.xlane.xlu0 %1873 }
 0x58f   :  { %v1875_v43 = vmul.f32 0.03125, %v1874_v56 }
 0x591   :  { %v1876_v57 = vsub.f32 %v1866_v49, %v1875_v43 }
 0x592   :  { %v949_v58 = vpop.xlane.xlu0 %948 }
 0x593   :  { %v951_v59 = vmul.f32 0.03125, %v949_v58  ;;  %v1877_v60 = vmul.f32 %v1876_v57, %v1876_v57 }
 0x595   :  { %v952_v62 = vsub.f32 %v4429_v9, %v951_v59  ;;  %v1878_v63 = vsel %vm946_vm9, %v1877_v60, 0.0  ;;  %v2149_v9 = vld [vmem:[%s4554_s5 + $0x1] ss:$0 sm:$0xff] }
 0x596   :  { %1879 = vadd.xlane.f32.xlu1 %v1878_v63 }
 0x597   :  { %v953_v0 = vmul.f32 %v952_v62, %v952_v62 }
 0x599   :  { %v954_v2 = vsel %vm946_vm9, %v953_v0, 0.0 }
 0x59a   :  { %955 = vadd.xlane.f32.xlu1 %v954_v2 }
 0x61f   :  { %v1880_v3 = vpop.xlane.xlu1 %1879 }
 0x620   :  { %v1881_v4 = vmul.f32 0.03125, %v1880_v3 }
 0x622   :  { %v1882_v5 = vadd.f32 1e-05, %v1881_v4 }
 0x623   :  { %v956_v7 = vpop.xlane.xlu1 %955 }
 0x624   :  { %2615 = vrsqrt.f32 %v1882_v5  ;;  %v957_v8 = vmul.f32 0.03125, %v956_v7 }
 0x626   :  { %v958_v21 = vadd.f32 1e-05, %v957_v8 }
 0x628   :  { %2617 = vrsqrt.f32 %v958_v21 }
 0x631   :  { %v2616_v11 = vpop.eup %2615 }
 0x632   :  { %v1884_v12 = vmul.f32 %v2616_v11, %v1876_v57 }
 0x634   :  { %v1893_v13 = vmul.f32 %v2149_v9, %v1884_v12 }
 0x635   :  { %v2618_v15 = vpop.eup %2617 }
 0x636   :  { %v960_v53 = vmul.f32 %v2618_v15, %v952_v62  ;;  %v1902_v17 = vadd.f32 %v2151_v1, %v1893_v13 }
 0x638   :  { %v1906_v10 = vpack.c.bf16 %v1902_v17, %v1902_v17  ;;  %v1904_v19 = vcombine.high %v1902_v17, %v1902_v17  ;;  %v968_v20 = vmul.f32 %v2126_v16, %v960_v53 }
 0x63a   :  { %v1913_v61 = vsel %vm946_vm9, %v1906_v10, 0  ;;  %v1907_v27 = vpack.c.bf16 %v1904_v19, %v1904_v19  ;;  %v976_v22 = vadd.f32 %v2127_v18, %v968_v20 }
 0x63b   :  { %2585 = vmatpush3.bf16.xpose.msra.mxu0 %v1913_v61 }
 0x63c   :  { %v1959_v23 = vsel %vm946_vm9, %v1907_v27, 0  ;;  %2596 = vmatprep.subr.bf16.mxu0 %v2678_v35  ;;  %v978_v24 = vcombine.high %v976_v22, %v976_v22  ;;  %v980_v25 = vpack.c.bf16 %v976_v22, %v976_v22 }
 0x63d   :  { %2591 = vmatpush3.bf16.xpose.msra.mxu1 %v1959_v23 }
 0x63e   :  { %2602 = vmatprep.subr.bf16.mxu1 %v2678_v35  ;;  %v981_v14 = vpack.c.bf16 %v978_v24, %v978_v24  ;;  %v1910_v26 = vsel %vm946_vm9, %v980_v25, 0 }
 0x640   :  { %v1956_v6 = vsel %vm946_vm9, %v981_v14, 0 }
 0x642   :  { %2587 = vmatmul.mubr.msk.bf16.vlgmr.msra.gmra.mxu0 %vm946_vm9, %v980_v25 }
 0x643   :  { %2597 = vmatpush3.bf16.xpose.msra.mxu0 %v1910_v26  ;;  %2598 = vmatprep.mubr.msk.bf16.mxu0 %vm2679_vm0, %v2678_v35 }
 0x644   :  { %2593 = vmatmul.mubr.msk.bf16.vlgmr.msra.gmra.mxu1 %vm946_vm9, %v981_v14 }
 0x645   :  { %2603 = vmatpush3.bf16.xpose.msra.mxu1 %v1956_v6  ;;  %2604 = vmatprep.mubr.msk.bf16.mxu1 %vm2679_vm0, %v2678_v35 }
 0x64a   :  { %2599 = vmatmul.mubr.msk.bf16.vlgmr.msra.gmra.mxu0 %vm946_vm9, %v1906_v10 }
 0x64c   :  { %2605 = vmatmul.mubr.msk.bf16.vlgmr.msra.gmra.mxu1 %vm946_vm9, %v1907_v27 }
 0x702   :  { %v1949_v31 = vpop.f32.mrf.mxu0 }
 0x703   :  { %v2082_v32 = vmul.f32 %v2081_v30, %v1949_v31 }
 0x704   :  { %v2588_v33 = vpop.f32.mrf.mxu0  ;;  %v1995_v52 = vpop.f32.mrf.mxu1 }
 0x705   :  { %2085 = vst.msk [vmem:[#allocation6] sm:$0xf] %vm2084_vm10, %v2082_v32  ;;  %v2083_v36 = vmul.f32 %v2081_v30, %v1995_v52 }
 0x706   :  { %v1952_v35 = vpop.f32.mrf.mxu0  ;;  %v2594_v37 = vpop.f32.mrf.mxu1 }
 0x707   :  { %2086 = vst.msk [vmem:[#allocation6 + $0x4] sm:$0xf] %vm2084_vm10, %v2083_v36 }
 0x708   :  { %v2589_v38 = vpop.f32.mrf.mxu0  ;;  %v1998_v39 = vpop.f32.mrf.mxu1 }
 0x709   :  { %2642 = shalt.err (!%p2639_p9)
}
 0x70a   :  { %s2681_s8 = smov 64   ;;  %s2682_s7 = smov 4   ;;  %v2595_v29 = vpop.f32.mrf.mxu1  ;;  %v2035_v40 = vpop.f32.mrf.mxu0 }
 0x70b   :  { %2102 = dma.vmem_to_hbm [thread:$0]  %s2097_s20, 128, %s4558_s9, [#allocation4], %s2681_s8, %s2681_s8, %s2682_s7   ;;  %v2087_v34 = vmul.f32 %v2081_v30, %v2035_v40 }
 0x70c   :  { %s2683_s23 = smov [#allocation7]   ;;  %v2600_v41 = vpop.f32.mrf.mxu0  ;;  %v2075_v42 = vpop.f32.mrf.mxu1 }
 0x70d   :  { %s2108_s24 = sshll.u32 %s2683_s23, 4  ;;  %2089 = vst.msk [vmem:[#allocation7] sm:$0xf] %vm2084_vm10, %v2087_v34  ;;  %v2088_v44 = vmul.f32 %v2081_v30, %v2075_v42  ;;  %s2109_s24 = int_to_ptr.vmem [resolvable:$true] %s2108_s24 }
 0x70e   :  { %v2038_v45 = vpop.f32.mrf.mxu0  ;;  %v2606_v46 = vpop.f32.mrf.mxu1  ;;  %s2651_s25 = scalar_lea.vmem %s2109_s24, 128  ;;  %p2656_p11 = scmp.lt.s32.totalorder %s2109_s24, %s2109_s24 }
 0x70f   :  { %2090 = vst.msk [vmem:[#allocation7 + $0x4] sm:$0xf] %vm2084_vm10, %v2088_v44  ;;  %p2652_p10 = scmp.ne.s32.totalorder %s2109_s24, %s2651_s25  ;;  %p2657_p12 = scmp.lt.s32.totalorder %s2651_s25, %s2651_s25 }
 0x710   :  { %v2601_v47 = vpop.f32.mrf.mxu0  ;;  %v2078_v48 = vpop.f32.mrf.mxu1 }
 0x711   :  { %p2658_p13 = por %p2657_p12, %p2656_p11 }
 0x713   :  { %p2659_p0 = pnand %p2658_p13, %p2652_p10 }
 0x715   :  { %2662 = shalt.err (!%p2659_p0)
}
 0x716   :  { %2114 = dma.vmem_to_hbm [thread:$0]  %s2109_s24, 128, %s4559_s10, [#allocation8], %s2681_s8, %s2681_s8, %s2682_s7   ;;  %v2607_v49 = vpop.f32.mrf.mxu1 }
 0x717   :  { %2673 = dma.done.wait [#allocation4], 128  }
 0x718   :  { %2674 = vsyncadd [#allocation4], 4294967168 }
 0x719   :  { %2675 = dma.done.wait [#allocation8], 128  }
 0x71a   :  { %2676 = vsyncadd [#allocation8], 4294967168 }
 0x71b   :  { %2121 = vsyncpa [#allocation4], 1 }
 0x71c   :  { %2122 = vsyncpa [#allocation8], 1 }
 0x71d   :  { %2123 = vsyncpa [#allocation5], 1 }

</bundles_post_ra>
